<compile_context>
chip_gen: v6e
topology: v6e:2x2x1
jax: 0.10.0
libtpu: 0.0.40
codegen_flags: <defaults>
</compile_context>

<pallas_src>
from functools import partial

import jax
import jax.numpy as jnp
from jax.experimental import pallas as pl
from jax.experimental.pallas import tpu as pltpu

HIDDEN1 = 128   # encoder_l1 output features
HIDDEN2 = 30    # encoder_l2 output features
FEAT = 960      # C * V (fixed by nn.Linear(960, 128))


def autoencoder_kernel(x_ref, w1t_ref, b1_ref, w2_ref, b2_ref,
                       w3_ref, b3_ref, w4t_ref, b4_ref,
                       out_ref, hid_ref):
    BB, T, _ = x_ref.shape

    # ---- encoder_l1: Linear(960, 128) + Tanh — one (BB*T, 960) @ (960, 128) bf16 MXU matmul.
    x2d = x_ref[...].reshape(BB * T, FEAT)                                    # bf16
    h1 = jnp.tanh(
        jnp.dot(x2d, w1t_ref[...], preferred_element_type=jnp.float32)
        + b1_ref[...])                                                        # (BB*T, 128) f32
    h1 = h1.reshape(BB, T, HIDDEN1)

    # ---- encoder_l2 (Linear(T, 30) + Tanh) in transposed orientation (no in-kernel .T):
    #      h2t[b, s, k] = tanh(sum_t W2[s, t] * h1[b, t, k] + b2[s])
    w2b = jnp.broadcast_to(w2_ref[...], (BB, HIDDEN2, T))                     # (BB, 30, T)
    h2t = jnp.tanh(
        jnp.einsum('bst,btk->bsk', w2b, h1, preferred_element_type=jnp.float32)
        + b2_ref[...])                                                        # (BB, 30, 128) f32
    hid_ref[...] = h2t                                                        # lane-dense store

    # ---- decoder_l1 (Linear(30, T) + Tanh), same orientation:
    #      d1t[b, t, k] = tanh(sum_s W3[t, s] * h2t[b, s, k] + b3[t])
    w3b = jnp.broadcast_to(w3_ref[...], (BB, T, HIDDEN2))                     # (BB, T, 30)
    d1t = jnp.tanh(
        jnp.einsum('bts,bsk->btk', w3b, h2t, preferred_element_type=jnp.float32)
        + b3_ref[...])                                                        # (BB, T, 128) f32

    # ---- decoder_l2: Linear(128, 960) — one (BB*T, 128) @ (128, 960) bf16 MXU matmul,
    #      f32 accumulate + bias, stored as bf16 (largest HBM stream -> half width).
    d2d = d1t.reshape(BB * T, HIDDEN1).astype(w4t_ref.dtype)
    out2d = (jnp.dot(d2d, w4t_ref[...], preferred_element_type=jnp.float32)
             + b4_ref[...])                                                   # (BB*T, 960) f32
    out_ref[...] = out2d.reshape(BB, T, FEAT).astype(out_ref.dtype)


def init_params(key, T):
    """Deterministic parameter init matching the nn.Linear shapes (W: (out, in), b: (out,))."""
    ks = jax.random.split(key, 8)

    def lin(kw, kb, fan_in, fan_out):
        bound = 1.0 / jnp.sqrt(fan_in)
        w = jax.random.uniform(kw, (fan_out, fan_in), jnp.float32, -bound, bound)
        b = jax.random.uniform(kb, (fan_out,), jnp.float32, -bound, bound)
        return w, b

    w1, b1 = lin(ks[0], ks[1], FEAT, HIDDEN1)     # encoder_l1: Linear(960, 128)
    w2, b2 = lin(ks[2], ks[3], T, HIDDEN2)        # encoder_l2: Linear(T, 30)
    w3, b3 = lin(ks[4], ks[5], HIDDEN2, T)        # decoder_l1: Linear(30, T)
    w4, b4 = lin(ks[6], ks[7], HIDDEN1, FEAT)     # decoder_l2: Linear(128, 960)
    return (w1, b1, w2, b2, w3, b3, w4, b4)


def _pick_block_b(block_b, B, T):
    """Cap BB by a per-step VMEM budget and snap it to a divisor of B (avoids padding)."""
    # Rough per-sample VMEM bytes at the chosen block size:
    #   double-buffered I/O blocks: x bf16 (T*960*2) + out bf16 (T*960*2) + hid f32 (30*128*4)
    #   in-kernel f32 intermediates: h1 / d1t (T*128*4 each), h2t (30*128*4), f32 out accum (T*960*4)
    per_sample = (2 * (2 * T * FEAT + 2 * T * FEAT + 4 * HIDDEN2 * HIDDEN1)
                  + 2 * 4 * T * HIDDEN1 + 4 * HIDDEN2 * HIDDEN1 + 4 * T * FEAT)
    budget = 24 << 20     # keep block VMEM well under the 48 MiB scoped limit (v7x headroom)
    cap = max(1, budget // max(per_sample, 1))
    bb = int(max(1, min(block_b, B, cap)))
    div = bb
    while B % div != 0:
        div -= 1
    # Snap to a divisor of B when that doesn't shrink the block too much (no padded tail,
    # no post-kernel slice); otherwise keep bb and pad.
    if div >= max(1, bb // 2):
        return div
    return bb


def autoencoder_forward(x, params, *, block_b=64):
    """x: (N, M, C, T, V) float32 with C*V == 960. Returns (recon, hidden_feature)."""
    N, M, C, T, V = x.shape
    assert C * V == FEAT
    B = N * M

    w1, b1, w2, b2, w3, b3, w4, b4 = params

    # (N, M, C, T, V) f32 -> (B, T, C*V) bf16: one fused XLA transpose+convert copy.  The
    # permute has to stay wrapper-side to keep the module's input layout; the bf16 cast halves
    # both its write side and the kernel's x DMA.
    x_btf = jnp.transpose(x, (0, 1, 3, 2, 4)).reshape(B, T, FEAT).astype(jnp.bfloat16)

    BB = _pick_block_b(block_b, B, T)
    Bp = ((B + BB - 1) // BB) * BB
    if Bp != B:
        x_btf = jnp.pad(x_btf, ((0, Bp - B), (0, 0), (0, 0)))

    # Weight prep: pre-transpose the two 960-wide Linears (PyTorch Linear: y = x W^T + b) and
    # cast them to bf16 (MXU inputs).  Middle-layer weights stay f32; biases are lane-dense.
    w1t = w1.T.astype(jnp.bfloat16)                                               # (960, 128)
    w4t = w4.T.astype(jnp.bfloat16)                                               # (128, 960)
    w2f = w2.astype(jnp.float32)                                                  # (30, T)
    w3f = w3.astype(jnp.float32)                                                  # (T, 30)
    b1r = b1[None, :].astype(jnp.float32)                                         # (1, 128)
    b4r = b4[None, :].astype(jnp.float32)                                         # (1, 960)
    b2d = jnp.broadcast_to(b2[:, None], (HIDDEN2, HIDDEN1)).astype(jnp.float32)   # (30, 128)
    b3d = jnp.broadcast_to(b3[:, None], (T, HIDDEN1)).astype(jnp.float32)         # (T, 128)

    def full(shape):
        return pl.BlockSpec(shape, lambda b: (0, 0))

    out, hid = pl.pallas_call(
        autoencoder_kernel,
        out_shape=(
            jax.ShapeDtypeStruct((Bp, T, FEAT), jnp.bfloat16),         # bf16 recon stream
            jax.ShapeDtypeStruct((Bp, HIDDEN2, HIDDEN1), jnp.float32), # lane-dense hidden
        ),
        grid_spec=pltpu.PrefetchScalarGridSpec(
            num_scalar_prefetch=0,
            grid=(Bp // BB,),
            in_specs=[
                pl.BlockSpec((BB, T, FEAT), lambda b: (b, 0, 0)),   # x slab (BB samples)
                full((FEAT, HIDDEN1)), full((1, HIDDEN1)),          # W1^T, b1
                full((HIDDEN2, T)),    full((HIDDEN2, HIDDEN1)),    # W2,   b2 (lane-dense)
                full((T, HIDDEN2)),    full((T, HIDDEN1)),          # W3,   b3 (lane-dense)
                full((HIDDEN1, FEAT)), full((1, FEAT)),             # W4^T, b4
            ],
            out_specs=[
                pl.BlockSpec((BB, T, FEAT), lambda b: (b, 0, 0)),
                pl.BlockSpec((BB, HIDDEN2, HIDDEN1), lambda b: (b, 0, 0)),
            ],
        ),
        compiler_params=pltpu.CompilerParams(
            dimension_semantics=("parallel",),
            vmem_limit_bytes=48 * 1024 * 1024,   # > v5e's 16 MiB / v6e's 32 MiB defaults, < v7x's 64 MiB VMEM
        ),
    )(x_btf, w1t, b1r, w2f, b2d, w3f, b3d, w4t, b4r)

    # Single fused copy: [:B] slice (if padded) + bf16->f32 convert + reshape + permute.
    # (B, T, FEAT) -> (N, M, T, C, V) -> permute(0,1,3,2,4) -> (N, M, C, T, V)
    recon = jnp.transpose(
        out[:B].astype(jnp.float32).reshape(N, M, T, C, V), (0, 1, 3, 2, 4))
    # hid is lane-dense (B, 30, 128); restore PyTorch (128, 30) orientation, then flatten.
    hidden_feature = jnp.transpose(hid[:B], (0, 2, 1)).reshape(N, -1)   # (N, M*128*30)
    return recon, hidden_feature


def _reference_forward(x, params):
    """Pure-JAX f32 reference reproducing the PyTorch forward exactly."""
    w1, b1, w2, b2, w3, b3, w4, b4 = params
    N, M, C, T, V = x.shape
    y = jnp.transpose(x, (0, 1, 3, 2, 4)).reshape(N, M, T, C * V)
    y = jnp.tanh(y @ w1.T + b1)                  # (N, M, T, 128)
    y = jnp.transpose(y, (0, 1, 3, 2))           # (N, M, 128, T)
    y = jnp.tanh(y @ w2.T + b2)                  # (N, M, 128, 30)
    hidden = y.reshape(N, -1)
    y = jnp.tanh(y @ w3.T + b3)                  # (N, M, 128, T)
    y = jnp.transpose(y, (0, 1, 3, 2))           # (N, M, T, 128)
    y = y @ w4.T + b4                            # (N, M, T, 960)
    y = jnp.transpose(y.reshape(N, M, T, C, V), (0, 1, 3, 2, 4))
    return y, hidden


if __name__ == "__main__":
    key = jax.random.PRNGKey(0)
    k_x, k_p = jax.random.split(key)

    # Small but consistent shapes: C * V must equal 960 (Linear(960, 128)).
    N, M, C, T, V = 4, 2, 64, 16, 15
    x = jax.random.normal(k_x, (N, M, C, T, V), jnp.float32)
    params = init_params(k_p, T)

    # block_b=4 with B=8 -> grid of 2 steps (exercises the multi-step / divisor path).
    fwd = jax.jit(partial(autoencoder_forward, block_b=4))
    recon, hidden = fwd(x, params)
    jax.block_until_ready((recon, hidden))

    # Sanity-check against the pure-JAX f32 reference (bf16 MXU inputs + bf16 reconstruction
    # store are a deliberate precision trade-off -> relaxed tolerance).
    recon_ref, hidden_ref = _reference_forward(x, params)
    assert recon.shape == (N, M, C, T, V)
    assert hidden.shape == (N, M * HIDDEN1 * HIDDEN2)
    assert jnp.allclose(recon, recon_ref, atol=5e-2, rtol=5e-2)
    assert jnp.allclose(hidden, hidden_ref, atol=5e-2, rtol=5e-2)

    print("KERNEL_OK")
</pallas_src>

<mosaic_0001>
module attributes {stable_mosaic.version = 11 : i64} {
  func.func @autoencoder_kernel(%arg0: i32, %arg1: memref<4x16x960xbf16, #tpu.memory_space<vmem>>, %arg2: memref<960x128xbf16, #tpu.memory_space<vmem>>, %arg3: memref<1x128xf32, #tpu.memory_space<vmem>>, %arg4: memref<30x16xf32, #tpu.memory_space<vmem>>, %arg5: memref<30x128xf32, #tpu.memory_space<vmem>>, %arg6: memref<16x30xf32, #tpu.memory_space<vmem>>, %arg7: memref<16x128xf32, #tpu.memory_space<vmem>>, %arg8: memref<128x960xbf16, #tpu.memory_space<vmem>>, %arg9: memref<1x960xf32, #tpu.memory_space<vmem>>, %arg10: memref<4x16x960xbf16, #tpu.memory_space<vmem>>, %arg11: memref<4x30x128xf32, #tpu.memory_space<vmem>>) attributes {dimension_semantics = [#tpu.dimension_semantics<parallel>], iteration_bounds = array<i64: 2>, scalar_prefetch = 0 : i64, scratch_operands = 0 : i64, tpu.core_type = #tpu.core_type<tc>, window_params = [{transform_indices = @transform_0, window_bounds = array<i64: 4, 16, 960>}, {pipeline_mode = #tpu.pipeline_mode<synchronous>, transform_indices = @transform_1, window_bounds = array<i64: 960, 128>}, {pipeline_mode = #tpu.pipeline_mode<synchronous>, transform_indices = @transform_2, window_bounds = array<i64: 1, 128>}, {pipeline_mode = #tpu.pipeline_mode<synchronous>, transform_indices = @transform_3, window_bounds = array<i64: 30, 16>}, {pipeline_mode = #tpu.pipeline_mode<synchronous>, transform_indices = @transform_4, window_bounds = array<i64: 30, 128>}, {pipeline_mode = #tpu.pipeline_mode<synchronous>, transform_indices = @transform_5, window_bounds = array<i64: 16, 30>}, {pipeline_mode = #tpu.pipeline_mode<synchronous>, transform_indices = @transform_6, window_bounds = array<i64: 16, 128>}, {pipeline_mode = #tpu.pipeline_mode<synchronous>, transform_indices = @transform_7, window_bounds = array<i64: 128, 960>}, {pipeline_mode = #tpu.pipeline_mode<synchronous>, transform_indices = @transform_8, window_bounds = array<i64: 1, 960>}, {transform_indices = @transform_9, window_bounds = array<i64: 4, 16, 960>}, {transform_indices = @transform_10, window_bounds = array<i64: 4, 30, 128>}]} {
    %c0 = arith.constant 0 : index
    %c0_0 = arith.constant 0 : index
    %c0_1 = arith.constant 0 : index
    %0 = vector.load %arg1[%c0, %c0_0, %c0_1] : memref<4x16x960xbf16, #tpu.memory_space<vmem>>, vector<4x16x960xbf16>
    %1 = vector.shape_cast %0 : vector<4x16x960xbf16> to vector<64x960xbf16>
    %c0_2 = arith.constant 0 : index
    %c0_3 = arith.constant 0 : index
    %2 = vector.load %arg2[%c0_2, %c0_3] : memref<960x128xbf16, #tpu.memory_space<vmem>>, vector<960x128xbf16>
    %cst = arith.constant dense<0.000000e+00> : vector<64x128xf32>
    %3 = tpu.matmul %1, %2, %cst {dimension_numbers = #tpu.dot_dimension_numbers<[1], [0], [0], [1], [0, 0, 1, 1], [], []>} : vector<64x960xbf16>, vector<960x128xbf16>, vector<64x128xf32> -> vector<64x128xf32>
    %c0_4 = arith.constant 0 : index
    %c0_5 = arith.constant 0 : index
    %4 = vector.load %arg3[%c0_4, %c0_5] : memref<1x128xf32, #tpu.memory_space<vmem>>, vector<1x128xf32>
    %5 = vector.broadcast %4 : vector<1x128xf32> to vector<64x128xf32>
    %6 = arith.addf %3, %5 : vector<64x128xf32>
    %7 = math.tanh %6 : vector<64x128xf32>
    %8 = vector.shape_cast %7 : vector<64x128xf32> to vector<4x16x128xf32>
    %c0_6 = arith.constant 0 : index
    %c0_7 = arith.constant 0 : index
    %9 = vector.load %arg4[%c0_6, %c0_7] : memref<30x16xf32, #tpu.memory_space<vmem>>, vector<30x16xf32>
    %10 = vector.shape_cast %9 : vector<30x16xf32> to vector<1x30x16xf32>
    %11 = vector.broadcast %10 : vector<1x30x16xf32> to vector<4x30x16xf32>
    "tpu.trace_start"() <{level = 10 : i32, message = "bst,btk->bsk"}> : () -> ()
    %cst_8 = arith.constant dense<0.000000e+00> : vector<4x30x128xf32>
    %12 = tpu.matmul %11, %8, %cst_8 {dimension_numbers = #tpu.dot_dimension_numbers<[2], [1], [1], [2], [0, 0, 0, 1, 1, 2], [0], [0]>} : vector<4x30x16xf32>, vector<4x16x128xf32>, vector<4x30x128xf32> -> vector<4x30x128xf32>
    "tpu.trace_stop"() : () -> ()
    %c0_9 = arith.constant 0 : index
    %c0_10 = arith.constant 0 : index
    %13 = vector.load %arg5[%c0_9, %c0_10] : memref<30x128xf32, #tpu.memory_space<vmem>>, vector<30x128xf32>
    %14 = vector.shape_cast %13 : vector<30x128xf32> to vector<1x30x128xf32>
    %15 = vector.broadcast %14 : vector<1x30x128xf32> to vector<4x30x128xf32>
    %16 = arith.addf %12, %15 : vector<4x30x128xf32>
    %17 = math.tanh %16 : vector<4x30x128xf32>
    %c0_11 = arith.constant 0 : index
    %c0_12 = arith.constant 0 : index
    %c0_13 = arith.constant 0 : index
    %18 = vector.load %arg11[%c0_11, %c0_12, %c0_13] : memref<4x30x128xf32, #tpu.memory_space<vmem>>, vector<4x30x128xf32>
    tpu.vector_store %arg11[%c0_11, %c0_12, %c0_13], %17 {strides = array<i32>} : memref<4x30x128xf32, #tpu.memory_space<vmem>>, vector<4x30x128xf32>,
    %c0_14 = arith.constant 0 : index
    %c0_15 = arith.constant 0 : index
    %19 = vector.load %arg6[%c0_14, %c0_15] : memref<16x30xf32, #tpu.memory_space<vmem>>, vector<16x30xf32>
    %20 = vector.shape_cast %19 : vector<16x30xf32> to vector<1x16x30xf32>
    %21 = vector.broadcast %20 : vector<1x16x30xf32> to vector<4x16x30xf32>
    "tpu.trace_start"() <{level = 10 : i32, message = "bts,bsk->btk"}> : () -> ()
    %cst_16 = arith.constant dense<0.000000e+00> : vector<4x16x128xf32>
    %22 = tpu.matmul %21, %17, %cst_16 {dimension_numbers = #tpu.dot_dimension_numbers<[2], [1], [1], [2], [0, 0, 0, 1, 1, 2], [0], [0]>} : vector<4x16x30xf32>, vector<4x30x128xf32>, vector<4x16x128xf32> -> vector<4x16x128xf32>
    "tpu.trace_stop"() : () -> ()
    %c0_17 = arith.constant 0 : index
    %c0_18 = arith.constant 0 : index
    %23 = vector.load %arg7[%c0_17, %c0_18] : memref<16x128xf32, #tpu.memory_space<vmem>>, vector<16x128xf32>
    %24 = vector.shape_cast %23 : vector<16x128xf32> to vector<1x16x128xf32>
    %25 = vector.broadcast %24 : vector<1x16x128xf32> to vector<4x16x128xf32>
    %26 = arith.addf %22, %25 : vector<4x16x128xf32>
    %27 = math.tanh %26 : vector<4x16x128xf32>
    %28 = vector.shape_cast %27 : vector<4x16x128xf32> to vector<64x128xf32>
    %29 = arith.truncf %28 : vector<64x128xf32> to vector<64x128xbf16>
    %c0_19 = arith.constant 0 : index
    %c0_20 = arith.constant 0 : index
    %30 = vector.load %arg8[%c0_19, %c0_20] : memref<128x960xbf16, #tpu.memory_space<vmem>>, vector<128x960xbf16>
    %cst_21 = arith.constant dense<0.000000e+00> : vector<64x960xf32>
    %31 = tpu.matmul %29, %30, %cst_21 {dimension_numbers = #tpu.dot_dimension_numbers<[1], [0], [0], [1], [0, 0, 1, 1], [], []>} : vector<64x128xbf16>, vector<128x960xbf16>, vector<64x960xf32> -> vector<64x960xf32>
    %c0_22 = arith.constant 0 : index
    %c0_23 = arith.constant 0 : index
    %32 = vector.load %arg9[%c0_22, %c0_23] : memref<1x960xf32, #tpu.memory_space<vmem>>, vector<1x960xf32>
    %33 = vector.broadcast %32 : vector<1x960xf32> to vector<64x960xf32>
    %34 = arith.addf %31, %33 : vector<64x960xf32>
    %35 = vector.shape_cast %34 : vector<64x960xf32> to vector<4x16x960xf32>
    %36 = arith.truncf %35 : vector<4x16x960xf32> to vector<4x16x960xbf16>
    %c0_24 = arith.constant 0 : index
    %c0_25 = arith.constant 0 : index
    %c0_26 = arith.constant 0 : index
    %37 = vector.load %arg10[%c0_24, %c0_25, %c0_26] : memref<4x16x960xbf16, #tpu.memory_space<vmem>>, vector<4x16x960xbf16>
    tpu.vector_store %arg10[%c0_24, %c0_25, %c0_26], %36 {strides = array<i32>} : memref<4x16x960xbf16, #tpu.memory_space<vmem>>, vector<4x16x960xbf16>,
    return
  }
  func.func @transform_0(%arg0: i32) -> (i32, i32, i32) {
    %c0_i32 = arith.constant 0 : i32
    %c0_i32_0 = arith.constant 0 : i32
    %c0_i32_1 = arith.constant 0 : i32
    return %arg0, %c0_i32, %c0_i32_0 : i32, i32, i32
  }
  func.func @transform_1(%arg0: i32) -> (i32, i32) {
    %c0_i32 = arith.constant 0 : i32
    %c0_i32_0 = arith.constant 0 : i32
    %c0_i32_1 = arith.constant 0 : i32
    return %c0_i32, %c0_i32_0 : i32, i32
  }
  func.func @transform_2(%arg0: i32) -> (i32, i32) {
    %c0_i32 = arith.constant 0 : i32
    %c0_i32_0 = arith.constant 0 : i32
    %c0_i32_1 = arith.constant 0 : i32
    return %c0_i32, %c0_i32_0 : i32, i32
  }
  func.func @transform_3(%arg0: i32) -> (i32, i32) {
    %c0_i32 = arith.constant 0 : i32
    %c0_i32_0 = arith.constant 0 : i32
    %c0_i32_1 = arith.constant 0 : i32
    return %c0_i32, %c0_i32_0 : i32, i32
  }
  func.func @transform_4(%arg0: i32) -> (i32, i32) {
    %c0_i32 = arith.constant 0 : i32
    %c0_i32_0 = arith.constant 0 : i32
    %c0_i32_1 = arith.constant 0 : i32
    return %c0_i32, %c0_i32_0 : i32, i32
  }
  func.func @transform_5(%arg0: i32) -> (i32, i32) {
    %c0_i32 = arith.constant 0 : i32
    %c0_i32_0 = arith.constant 0 : i32
    %c0_i32_1 = arith.constant 0 : i32
    return %c0_i32, %c0_i32_0 : i32, i32
  }
  func.func @transform_6(%arg0: i32) -> (i32, i32) {
    %c0_i32 = arith.constant 0 : i32
    %c0_i32_0 = arith.constant 0 : i32
    %c0_i32_1 = arith.constant 0 : i32
    return %c0_i32, %c0_i32_0 : i32, i32
  }
  func.func @transform_7(%arg0: i32) -> (i32, i32) {
    %c0_i32 = arith.constant 0 : i32
    %c0_i32_0 = arith.constant 0 : i32
    %c0_i32_1 = arith.constant 0 : i32
    return %c0_i32, %c0_i32_0 : i32, i32
  }
  func.func @transform_8(%arg0: i32) -> (i32, i32) {
    %c0_i32 = arith.constant 0 : i32
    %c0_i32_0 = arith.constant 0 : i32
    %c0_i32_1 = arith.constant 0 : i32
    return %c0_i32, %c0_i32_0 : i32, i32
  }
  func.func @transform_9(%arg0: i32) -> (i32, i32, i32) {
    %c0_i32 = arith.constant 0 : i32
    %c0_i32_0 = arith.constant 0 : i32
    %c0_i32_1 = arith.constant 0 : i32
    return %arg0, %c0_i32, %c0_i32_0 : i32, i32, i32
  }
  func.func @transform_10(%arg0: i32) -> (i32, i32, i32) {
    %c0_i32 = arith.constant 0 : i32
    %c0_i32_0 = arith.constant 0 : i32
    %c0_i32_1 = arith.constant 0 : i32
    return %arg0, %c0_i32, %c0_i32_0 : i32, i32, i32
  }
}

</mosaic_0001>

<bundles_post_ra>
// kernel: autoencoder_forward.1
= control target key start
LH: loop header
LB: loop body
LE: loop exit
PB: predicated region body
PF: predicated region fallthrough
CT: control target
= control target key end

     0   :  { %s3830_s13 = smov 0   ;;  %s4632_s0 = inlined_call_operand.vmem [shape: bf16[8,16,960], index: 0, kind: input, shape index: {}]   ;;  %s4633_s1 = inlined_call_operand.vmem [shape: bf16[960,128], index: 1, kind: input, shape index: {}]   ;;  %s4634_s2 = inlined_call_operand.vmem [shape: f32[1,128], index: 2, kind: input, shape index: {}]   ;;  %s4635_s3 = inlined_call_operand.vmem [shape: f32[30,16], index: 3, kind: input, shape index: {}]   ;;  %s4636_s4 = inlined_call_operand.vmem [shape: f32[30,128], index: 4, kind: input, shape index: {}]   ;;  %s4637_s5 = inlined_call_operand.vmem [shape: f32[16,30], index: 5, kind: input, shape index: {}]   ;;  %s4638_s6 = inlined_call_operand.vmem [shape: f32[16,128], index: 6, kind: input, shape index: {}]   ;;  %s4639_s7 = inlined_call_operand.vmem [shape: bf16[128,960], index: 7, kind: input, shape index: {}]   ;;  %s4640_s8 = inlined_call_operand.vmem [shape: f32[1,960], index: 8, kind: input, shape index: {}]   ;;  %s4641_s9 = inlined_call_operand.vmem [shape: bf16[8,16,960], index: 9, kind: output, shape index: {0}]   ;;  %s4642_s10 = inlined_call_operand.vmem [shape: f32[8,30,128], index: 10, kind: output, shape index: {1}]  }
   0x1 LB: > { %s3109_s14 = sadd.s32 4294967295, %s3772_s13   ;;  %p3113_p0 = scmp.ge.s32.totalorder %s3772_s13, 1  ;;  %s3772_s13 = sphi %s3830_s13, %s21_s13  }
   0x2   : > { %p317_p1 = scmp.lt.s32.totalorder %s3772_s13, 3 }
   0x4   : > { %p318_p2 = pnand %p3113_p0, %p317_p1 }
   0x5   : > { %s3114_s29 = sshll.u32 (!%p318_p2), %s3109_s14, 2 }
   0x6   : > { %321 = sbr.rel (%p318_p2) target bundleno = 1005 (0x3ed), region = 56  ;;  %p364_p3 = scmp.lt.s32.totalorder (!%p318_p2), %s3114_s29, 7 }
   0xb   : > { %v3642_v0 = vld [vmem:[%s4633_s1 + $0x78] sm:$0xff]   ;;  %v3646_v4 = vld [vmem:[%s4633_s1 + $0x70] sm:$0xff]   ;;  %v3650_v8 = vld [vmem:[%s4633_s1 + $0x68] sm:$0xff]   ;;  %s4646_s29 = smov (!%p364_p3, %s3114_s29), 7  ;;  %v3774_v41 = vmov 0   ;;  %vm1060_vm0 = vcmask 523264  }
   0xc   : > { %v3643_v1 = vld [vmem:[%s4633_s1 + $0xf8] sm:$0xff]   ;;  %3381 = vmatprep.subr.bf16.mxu0 %v3642_v0  ;;  %v3647_v5 = vld [vmem:[%s4633_s1 + $0xf0] sm:$0xff]   ;;  %v3651_v9 = vld [vmem:[%s4633_s1 + $0xe8] sm:$0xff]   ;;  %s3346_s16 = sshll.u32 %s4646_s29, 6  ;;  %vm1349_vm1 = vcmask 130048   ;;  %vm1738_vm2 = vcmask 244736  }
   0xd   : > { %v3644_v2 = vld [vmem:[%s4633_s1 + $0x38] sm:$0xff]   ;;  %3421 = vmatprep.subr.bf16.mxu1 %v3643_v1  ;;  %v3648_v6 = vld [vmem:[%s4633_s1 + $0x30] sm:$0xff]   ;;  %v3652_v10 = vld [vmem:[%s4633_s1 + $0x28] sm:$0xff]   ;;  %s3938_s24 = scalar_lea.vmem %s4632_s0, %s3346_s16  ;;  %s3348_s22 = sshll.u32 %s4646_s29, 5  ;;  %vm1745_vm3 = vcmask 1045504   ;;  %vm2983_vm4 = vcmask 1043456  }
   0xe   : > { %v3645_v3 = vld [vmem:[%s4633_s1 + $0xb8] sm:$0xff]   ;;  %3382 = vmatpush3.bf16.msra.mxu0 %v3644_v2  ;;  %v3649_v7 = vld [vmem:[%s4633_s1 + $0xb0] sm:$0xff]   ;;  %v3653_v11 = vld [vmem:[%s4633_s1 + $0xa8] sm:$0xff]   ;;  %s4191_s26 = scalar_lea.vmem %s4642_s10, %s3348_s22  ;;  %s4499_s11 = scalar_lea.vmem %s4641_s9, %s3346_s16  ;;  %vm2984_vm5 = vcmask 523268  }
   0xf   : > { %3422 = vmatpush3.bf16.msra.mxu1 %v3645_v3  ;;  %3383 = vmatprep.subr.bf16.mxu0 %v3646_v4  ;;  %v3654_v12 = vld [vmem:[%s4633_s1 + $0x60] sm:$0xff]   ;;  %v3658_v16 = vld [vmem:[%s4633_s1 + $0x58] sm:$0xff]   ;;  %v3662_v20 = vld [vmem:[%s4633_s1 + $0x50] sm:$0xff]  }
  0x10   : > { %3423 = vmatprep.subr.bf16.mxu1 %v3647_v5  ;;  %v3655_v13 = vld [vmem:[%s4633_s1 + $0xe0] sm:$0xff]   ;;  %v3659_v17 = vld [vmem:[%s4633_s1 + $0xd8] sm:$0xff]   ;;  %v3663_v21 = vld [vmem:[%s4633_s1 + $0xd0] sm:$0xff]  }
  0x11   : > { %v3656_v14 = vld [vmem:[%s4633_s1 + $0x20] sm:$0xff]   ;;  %v3660_v18 = vld [vmem:[%s4633_s1 + $0x18] sm:$0xff]   ;;  %v3664_v22 = vld [vmem:[%s4633_s1 + $0x10] sm:$0xff]  }
  0x12   : > { %3384 = vmatpush3.bf16.msra.mxu0 %v3648_v6  ;;  %v3657_v15 = vld [vmem:[%s4633_s1 + $0xa0] sm:$0xff]   ;;  %v3661_v19 = vld [vmem:[%s4633_s1 + $0x98] sm:$0xff]   ;;  %v3665_v23 = vld [vmem:[%s4633_s1 + $0x90] sm:$0xff]  }
  0x13   : > { %3424 = vmatpush3.bf16.msra.mxu1 %v3649_v7  ;;  %3385 = vmatprep.subr.bf16.mxu0 %v3650_v8  ;;  %v3666_v24 = vld [vmem:[%s4633_s1 + $0x48] sm:$0xff]   ;;  %v3670_v28 = vld [vmem:[%s4633_s1 + $0x40] sm:$0xff]   ;;  %v3674_v40 = vld [vmem:[%s4633_s1 + $0x178] sm:$0xff]  }
  0x14   : > { %3425 = vmatprep.subr.bf16.mxu1 %v3651_v9  ;;  %v3667_v25 = vld [vmem:[%s4633_s1 + $0xc8] sm:$0xff]   ;;  %v3671_v29 = vld [vmem:[%s4633_s1 + $0xc0] sm:$0xff]   ;;  %v3675_v42 = vld [vmem:[%s4633_s1 + $0x138] sm:$0xff]  }
  0x15   : > { %v3668_v26 = vld [vmem:[%s4633_s1 + $0x8] sm:$0xff]   ;;  %v3672_v30 = vld [vmem:[%s4633_s1] sm:$0xff]   ;;  %v3676_v43 = vld [vmem:[%s4633_s1 + $0x1b8] sm:$0xff]  }
  0x16   : > { %3386 = vmatpush3.bf16.msra.mxu0 %v3652_v10  ;;  %v3669_v27 = vld [vmem:[%s4633_s1 + $0x88] sm:$0xff]   ;;  %v3673_v31 = vld [vmem:[%s4633_s1 + $0x80] sm:$0xff]   ;;  %v3677_v44 = vld [vmem:[%s4633_s1 + $0x170] sm:$0xff]  }
  0x17   : > { %3426 = vmatpush3.bf16.msra.mxu1 %v3653_v11  ;;  %3387 = vmatprep.subr.bf16.mxu0 %v3654_v12  ;;  %v385_v32 = vld [vmem:[%s3938_s24] sm:$0xff]  ;;  %v386_v34 = vld [vmem:[%s3938_s24 + $0x8] sm:$0xff]  ;;  %v3678_v45 = vld [vmem:[%s4633_s1 + $0x130] sm:$0xff]  }
  0x18   : > { %3427 = vmatprep.subr.bf16.mxu1 %v3655_v13  ;;  %v389_v33 = vld [vmem:[%s3938_s24 + $0x20] sm:$0xff]  ;;  %v390_v37 = vld [vmem:[%s3938_s24 + $0x28] sm:$0xff]  ;;  %v3679_v46 = vld [vmem:[%s4633_s1 + $0x1b0] sm:$0xff]  }
  0x19   : > { %v3124_v35 = vcombine.low %v385_v32, %v389_v33  ;;  %v3125_v36 = vcombine.high %v385_v32, %v389_v33  ;;  %v3126_v38 = vcombine.low %v386_v34, %v390_v37  ;;  %v3127_v39 = vcombine.high %v386_v34, %v390_v37  ;;  %v393_v47 = vld [vmem:[%s3938_s24 + $0x40] sm:$0xff]  ;;  %v3680_v51 = vld [vmem:[%s4633_s1 + $0x168] sm:$0xff]   ;;  %v3686_v1 = vld [vmem:[%s4633_s1 + $0x158] sm:$0xff]  }
  0x1a   : > { %3388 = vmatpush3.bf16.msra.mxu0 %v3656_v14  ;;  %v397_v48 = vld [vmem:[%s3938_s24 + $0x60] sm:$0xff]  ;;  %v3681_v52 = vld [vmem:[%s4633_s1 + $0x128] sm:$0xff]   ;;  %v3687_v2 = vld [vmem:[%s4633_s1 + $0x118] sm:$0xff]  }
  0x1b   : > { %3428 = vmatpush3.bf16.msra.mxu1 %v3657_v15  ;;  %3389 = vmatprep.subr.bf16.mxu0 %v3658_v16  ;;  %v3133_v49 = vcombine.high %v393_v47, %v397_v48  ;;  %v3132_v50 = vcombine.low %v393_v47, %v397_v48  ;;  %v3682_v53 = vld [vmem:[%s4633_s1 + $0x1a8] sm:$0xff]   ;;  %v3683_v54 = vld [vmem:[%s4633_s1 + $0x160] sm:$0xff]   ;;  %v3688_v3 = vld [vmem:[%s4633_s1 + $0x198] sm:$0xff]  }
  0x1c   : > { %3429 = vmatprep.subr.bf16.mxu1 %v3659_v17  ;;  %1105 = vmatprep.mubr.bf16.mxu0 %v3125_v36  ;;  %v394_v55 = vld [vmem:[%s3938_s24 + $0x48] sm:$0xff]  ;;  %v3684_v58 = vld [vmem:[%s4633_s1 + $0x120] sm:$0xff]   ;;  %v3689_v4 = vld [vmem:[%s4633_s1 + $0x150] sm:$0xff]  }
  0x1d   : > { %1170 = vmatprep.mubr.bf16.mxu1 %v3127_v39  ;;  %v398_v56 = vld [vmem:[%s3938_s24 + $0x68] sm:$0xff]  ;;  %v3685_v60 = vld [vmem:[%s4633_s1 + $0x1a0] sm:$0xff]   ;;  %v3690_v8 = vld [vmem:[%s4633_s1 + $0x110] sm:$0xff]  }
  0x1e   : > { %3390 = vmatpush3.bf16.msra.mxu0 %v3660_v18  ;;  %v3135_v57 = vcombine.high %v394_v55, %v398_v56  ;;  %v3134_v59 = vcombine.low %v394_v55, %v398_v56  ;;  %v401_v61 = vld [vmem:[%s3938_s24 + $0x80] sm:$0xff]  ;;  %v402_v5 = vld [vmem:[%s3938_s24 + $0x88] sm:$0xff]  ;;  %v3691_v9 = vld [vmem:[%s4633_s1 + $0x190] sm:$0xff]  }
  0x1f   : > { %3430 = vmatpush3.bf16.msra.mxu1 %v3661_v19  ;;  %3391 = vmatprep.subr.bf16.mxu0 %v3662_v20  ;;  %v405_v62 = vld [vmem:[%s3938_s24 + $0xa0] sm:$0xff]  ;;  %v406_v6 = vld [vmem:[%s3938_s24 + $0xa8] sm:$0xff]  ;;  %v388_v33 = vld [vmem:[%s3938_s24 + $0x18] sm:$0xff] }
  0x20   : > { %3431 = vmatprep.subr.bf16.mxu1 %v3663_v21  ;;  %v3141_v63 = vcombine.high %v401_v61, %v405_v62  ;;  %v3140_v0 = vcombine.low %v401_v61, %v405_v62  ;;  %v3143_v7 = vcombine.high %v402_v5, %v406_v6  ;;  %v3142_v10 = vcombine.low %v402_v5, %v406_v6  ;;  %v409_v11 = vld [vmem:[%s3938_s24 + $0xc0] sm:$0xff]  ;;  %v3692_v14 = vld [vmem:[%s4633_s1 + $0x148] sm:$0xff]   ;;  %v392_v34 = vld [vmem:[%s3938_s24 + $0x38] sm:$0xff] }
  0x21   : > { %v413_v12 = vld [vmem:[%s3938_s24 + $0xe0] sm:$0xff]  ;;  %v3693_v16 = vld [vmem:[%s4633_s1 + $0x108] sm:$0xff]   ;;  %v3699_v36 = vld [vmem:[%s4633_s1 + $0x1d0] sm:$0xff]   ;;  %v3130_v48 = vcombine.low %v388_v33, %v392_v34 }
  0x22   : > { %3392 = vmatpush3.bf16.msra.mxu0 %v3664_v22  ;;  %v3149_v13 = vcombine.high %v409_v11, %v413_v12  ;;  %v3148_v15 = vcombine.low %v409_v11, %v413_v12  ;;  %v3694_v17 = vld [vmem:[%s4633_s1 + $0x188] sm:$0xff]   ;;  %v3695_v18 = vld [vmem:[%s4633_s1 + $0x140] sm:$0xff]   ;;  %v403_v37 = vld [vmem:[%s3938_s24 + $0x90] sm:$0xff] }
  0x23   : > { %3432 = vmatpush3.bf16.msra.mxu1 %v3665_v23  ;;  %3393 = vmatprep.subr.bf16.mxu0 %v3666_v24  ;;  %v410_v19 = vld [vmem:[%s3938_s24 + $0xc8] sm:$0xff]  ;;  %v3696_v22 = vld [vmem:[%s4633_s1 + $0x100] sm:$0xff]   ;;  %v387_v24 = vld [vmem:[%s3938_s24 + $0x10] sm:$0xff] }
  0x24   : > { %3433 = vmatprep.subr.bf16.mxu1 %v3667_v25  ;;  %v414_v20 = vld [vmem:[%s3938_s24 + $0xe8] sm:$0xff]  ;;  %v391_v25 = vld [vmem:[%s3938_s24 + $0x30] sm:$0xff]  ;;  %v400_v47 = vld [vmem:[%s3938_s24 + $0x78] sm:$0xff] }
  0x25   : > { %v3151_v21 = vcombine.high %v410_v19, %v414_v20  ;;  %v3150_v23 = vcombine.low %v410_v19, %v414_v20  ;;  %v4081_v62 = vld [vmem:[%s4635_s3] sm:$0xff]  ;;  %vm4565_vm6 = vmor %vm2984_vm5, %vm2983_vm4 }
  0x26   : > { %3394 = vmatpush3.bf16.msra.mxu0 %v3668_v26  ;;  %v3697_v26 = vld [vmem:[%s4633_s1 + $0x180] sm:$0xff]  }
  0x27   : > { %3434 = vmatpush3.bf16.msra.mxu1 %v3669_v27  ;;  %3395 = vmatprep.subr.bf16.mxu0 %v3670_v28  ;;  %v3129_v27 = vcombine.high %v387_v24, %v391_v25  ;;  %v395_v28 = vld [vmem:[%s3938_s24 + $0x50] sm:$0xff] }
  0x28   : > { %3435 = vmatprep.subr.bf16.mxu1 %v3671_v29  ;;  %v399_v29 = vld [vmem:[%s3938_s24 + $0x70] sm:$0xff] }
  0x29   : > { %v3137_v32 = vcombine.high %v395_v28, %v399_v29  ;;  %v3136_v39 = vcombine.low %v395_v28, %v399_v29 }
  0x2a   : > { %3396 = vmatpush3.bf16.msra.mxu0 %v3672_v30  ;;  %v3128_v30 = vcombine.low %v387_v24, %v391_v25 }
  0x2b   : > { %3436 = vmatpush3.bf16.msra.mxu1 %v3673_v31  ;;  %3461 = vmatprep.subr.bf16.mxu0 %v3674_v40  ;;  %v3698_v31 = vld [vmem:[%s4633_s1 + $0x1d8] sm:$0xff]   ;;  %v3700_v40 = vld [vmem:[%s4633_s1 + $0x1c8] sm:$0xff]  }
  0x2c   : > { %1268 = vmatprep.subr.bf16.mxu1 %v3774_v41 }
  0x2d   : > { %1106 = vmatmul.mubr.bf16.vlgmr.msra.gmra.mxu0 %v3124_v35  ;;  %v3131_v35 = vcombine.high %v388_v33, %v392_v34 }
  0x2e   : > { %1171 = vmatmul.mubr.bf16.vlgmr.msra.gmra.mxu1 %v3126_v38  ;;  %3462 = vmatpush3.bf16.msra.mxu0 %v3675_v42  ;;  %v407_v38 = vld [vmem:[%s3938_s24 + $0xb0] sm:$0xff] }
  0x2f   : > { %1269 = vmatpush1.bf16.msra.mxu1 %v3676_v43  ;;  %3463 = vmatprep.subr.bf16.mxu0 %v3677_v44  ;;  %v3145_v42 = vcombine.high %v403_v37, %v407_v38  ;;  %v3701_v43 = vld [vmem:[%s4633_s1 + $0x1c0] sm:$0xff]   ;;  %v411_v44 = vld [vmem:[%s3938_s24 + $0xd0] sm:$0xff] }
  0x30   : > { %1270 = vmatprep.subr.bf16.mxu1 %v3774_v41  ;;  %1113 = vmatprep.mubr.bf16.mxu0 %v3133_v49  ;;  %v3144_v49 = vcombine.low %v403_v37, %v407_v38 }
  0x31   : > { %1178 = vmatprep.mubr.bf16.mxu1 %v3135_v57  ;;  %v412_v57 = vld [vmem:[%s3938_s24 + $0xd8] sm:$0xff] }
  0x32   : > { %3464 = vmatpush3.bf16.msra.mxu0 %v3678_v45  ;;  %v415_v45 = vld [vmem:[%s3938_s24 + $0xf0] sm:$0xff] }
  0x33   : > { %1271 = vmatpush1.bf16.msra.mxu1 %v3679_v46  ;;  %3465 = vmatprep.subr.bf16.mxu0 %v3680_v51  ;;  %v396_v46 = vld [vmem:[%s3938_s24 + $0x58] sm:$0xff] }
  0x34   : > { %1272 = vmatprep.subr.bf16.mxu1 %v3774_v41  ;;  %v3139_v51 = vcombine.high %v396_v46, %v400_v47  ;;  %v3138_v55 = vcombine.low %v396_v46, %v400_v47 }
  0x35   : > { %1114 = vmatmul.mubr.bf16.gmra.mxu0 %v3132_v50  ;;  %v3153_v50 = vcombine.high %v411_v44, %v415_v45 }
  0x36   : > { %3466 = vmatpush3.bf16.msra.mxu0 %v3681_v52  ;;  %1179 = vmatmul.mubr.bf16.gmra.mxu1 %v3134_v59  ;;  %v404_v52 = vld [vmem:[%s3938_s24 + $0x98] sm:$0xff] }
  0x37   : > { %1273 = vmatpush1.bf16.msra.mxu1 %v3682_v53  ;;  %3467 = vmatprep.subr.bf16.mxu0 %v3683_v54  ;;  %v408_v53 = vld [vmem:[%s3938_s24 + $0xb8] sm:$0xff]  ;;  %v3152_v54 = vcombine.low %v411_v44, %v415_v45 }
  0x38   : > { %1274 = vmatprep.subr.bf16.mxu1 %v3774_v41  ;;  %1121 = vmatprep.mubr.bf16.mxu0 %v3141_v63  ;;  %v3147_v56 = vcombine.high %v404_v52, %v408_v53  ;;  %v3146_v59 = vcombine.low %v404_v52, %v408_v53 }
  0x39   : > { %1186 = vmatprep.mubr.bf16.mxu1 %v3143_v7 }
  0x3a   : > { %3468 = vmatpush3.bf16.msra.mxu0 %v3684_v58  ;;  %v416_v58 = vld [vmem:[%s3938_s24 + $0xf8] sm:$0xff] }
  0x3b   : > { %1275 = vmatpush1.bf16.msra.mxu1 %v3685_v60  ;;  %3469 = vmatprep.subr.bf16.mxu0 %v3686_v1  ;;  %v3155_v60 = vcombine.high %v412_v57, %v416_v58  ;;  %v3154_v61 = vcombine.low %v412_v57, %v416_v58 }
  0x3c   : > { %1276 = vmatprep.subr.bf16.mxu1 %v3774_v41 }
  0x3d   : > { %1122 = vmatmul.mubr.bf16.gmra.mxu0 %v3140_v0 }
  0x3e   : > { %3470 = vmatpush3.bf16.msra.mxu0 %v3687_v2  ;;  %1187 = vmatmul.mubr.bf16.gmra.mxu1 %v3142_v10 }
  0x3f   : > { %1277 = vmatpush1.bf16.msra.mxu1 %v3688_v3  ;;  %3471 = vmatprep.subr.bf16.mxu0 %v3689_v4 }
  0x40   : > { %1278 = vmatprep.subr.bf16.mxu1 %v3774_v41  ;;  %1129 = vmatprep.mubr.bf16.mxu0 %v3149_v13 }
  0x41   : > { %1194 = vmatprep.mubr.bf16.mxu1 %v3151_v21 }
  0x42   : > { %3472 = vmatpush3.bf16.msra.mxu0 %v3690_v8 }
  0x43   : > { %1279 = vmatpush1.bf16.msra.mxu1 %v3691_v9  ;;  %3473 = vmatprep.subr.bf16.mxu0 %v3692_v14 }
  0x44   : > { %1280 = vmatprep.subr.bf16.mxu1 %v3774_v41 }
  0x45   : > { %1130 = vmatmul.mubr.bf16.gmra.mxu0 %v3148_v15 }
  0x46   : > { %3474 = vmatpush3.bf16.msra.mxu0 %v3693_v16  ;;  %1235 = vmatprep.mubr.bf16.mxu0 %v3129_v27 }
  0x47   : > { %1281 = vmatpush1.bf16.msra.mxu1 %v3694_v17  ;;  %3475 = vmatprep.subr.bf16.mxu0 %v3695_v18 }
  0x48   : > { %1282 = vmatprep.subr.bf16.mxu1 %v3774_v41  ;;  %1195 = vmatmul.mubr.bf16.gmra.mxu1 %v3150_v23 }
  0x49   : > { %3216 = vmatprep.mubr.msk.bf16.mxu1 %vm1060_vm0, %v3131_v35 }
  0x4a   : > { %3476 = vmatpush3.bf16.msra.mxu0 %v3696_v22 }
  0x4b   : > { %1283 = vmatpush1.bf16.msra.mxu1 %v3697_v26 }
  0x4c   : > { %1292 = vmatprep.subr.bf16.mxu1 %v3774_v41 }
  0x4d   : > { %1236 = vmatmul.mubr.bf16.vlgmr.msra.gmra.mxu0 %v3128_v30 }
  0x4e   : > { %1243 = vmatprep.mubr.bf16.mxu0 %v3137_v32 }
  0x4f   : > { %1293 = vmatpush2.bf16.msra.mxu1 %v3698_v31 }
  0x50   : > { %1294 = vmatprep.subr.bf16.mxu1 %v3774_v41 }
  0x53   : > { %1295 = vmatpush2.bf16.msra.mxu1 %v3699_v36  ;;  %v4106_v36 = vld [vmem:[%s4634_s2] ss:$0 sm:$0xff] }
  0x54   : > { %1296 = vmatprep.subr.bf16.mxu1 %v3774_v41 }
  0x55   : > { %1244 = vmatmul.mubr.bf16.gmra.mxu0 %v3136_v39 }
  0x56   : > { %1251 = vmatprep.mubr.bf16.mxu0 %v3145_v42 }
  0x57   : > { %1297 = vmatpush2.bf16.msra.mxu1 %v3700_v40 }
  0x58   : > { %1298 = vmatprep.subr.bf16.mxu1 %v3774_v41 }
  0x5b   : > { %1299 = vmatpush2.bf16.msra.mxu1 %v3701_v43 }
  0x5d   : > { %1252 = vmatmul.mubr.bf16.gmra.mxu0 %v3144_v49 }
  0x5e   : > { %1301 = vmatmul.mubr.bf16.vlgmr.msra.gmra.mxu1 %v3130_v48  ;;  %1259 = vmatprep.mubr.bf16.mxu0 %v3153_v50 }
  0x5f   : > { %3217 = vmatprep.mubr.msk.bf16.mxu1 %vm1060_vm0, %v3139_v51 }
  0x65   : > { %1260 = vmatmul.mubr.bf16.gmra.mxu0 %v3152_v54 }
  0x66   : > { %1309 = vmatmul.mubr.bf16.gmra.mxu1 %v3138_v55  ;;  %3553 = vmatprep.mubr.msk.f32.mxu0 %vm1349_vm1, %v4081_v62 }
  0x67   : > { %3218 = vmatprep.mubr.msk.bf16.mxu1 %vm1060_vm0, %v3147_v56 }
  0x6e   : > { %1317 = vmatmul.mubr.bf16.gmra.mxu1 %v3146_v59 }
  0x6f   : > { %3219 = vmatprep.mubr.msk.bf16.mxu1 %vm1060_vm0, %v3155_v60 }
  0x76   : > { %1325 = vmatmul.mubr.bf16.gmra.mxu1 %v3154_v61 }
  0x77   : > { %3583 = vmatprep.mubr.msk.f32.mxu1 %vm1349_vm1, %v4081_v62 }
  0xed   : > { %v3397_v63 = vpop.f32.mrf.mxu0 }
  0xee   : > { %v3437_v0 = vpop.f32.mrf.mxu1 }
  0xef   : > { %v3398_v1 = vpop.f32.mrf.mxu0 }
  0xf0   : > { %v3438_v2 = vpop.f32.mrf.mxu1  ;;  %v3399_v34 = vadd.f32 %v3398_v1, %v3397_v63 }
  0xf1   : > { %v3400_v3 = vpop.f32.mrf.mxu0  ;;  %v3439_v45 = vadd.f32 %v3438_v2, %v3437_v0 }
  0xf2   : > { %v3440_v5 = vpop.f32.mrf.mxu1  ;;  %v1108_v40 = vadd.f32 %v3399_v34, %v4106_v36 }
  0xf3   : > { %v3401_v4 = vpop.f32.mrf.mxu0 }
  0xf4   : > { %v3441_v8 = vpop.f32.mrf.mxu1  ;;  %v3402_v35 = vadd.f32 %v3401_v4, %v3400_v3  ;;  %v1173_v52 = vadd.f32 %v3439_v45, %v1108_v40 }
  0xf5   : > { %v3403_v6 = vpop.f32.mrf.mxu0  ;;  %v3442_v46 = vadd.f32 %v3441_v8, %v3440_v5 }
  0xf6   : > { %v3443_v10 = vpop.f32.mrf.mxu1  ;;  %v1111_v42 = vadd.f32 %v3402_v35, %v4106_v36 }
  0xf7   : > { %v3404_v7 = vpop.f32.mrf.mxu0 }
  0xf8   : > { %v3444_v12 = vpop.f32.mrf.mxu1  ;;  %v3405_v49 = vadd.f32 %v3404_v7, %v3403_v6  ;;  %v1176_v53 = vadd.f32 %v3442_v46, %v1111_v42 }
  0xf9   : > { %v3406_v9 = vpop.f32.mrf.mxu0  ;;  %v3445_v60 = vadd.f32 %v3444_v12, %v3443_v10 }
  0xfa   : > { %v3446_v14 = vpop.f32.mrf.mxu1  ;;  %v1116_v59 = vadd.f32 %v3405_v49, %v4106_v36 }
  0xfb   : > { %v3407_v11 = vpop.f32.mrf.mxu0 }
  0xfc   : > { %v3447_v16 = vpop.f32.mrf.mxu1  ;;  %v3408_v54 = vadd.f32 %v3407_v11, %v3406_v9 }
  0xfd   : > { %v3409_v13 = vpop.f32.mrf.mxu0  ;;  %v3448_v1 = vadd.f32 %v3447_v16, %v3446_v14 }
  0xfe   : > { %v4087_v18 = vpop.f32.mrf.mxu1  ;;  %v1119_v0 = vadd.f32 %v3408_v54, %v4106_v36  ;;  %v1342_v54 = vld [vmem:[%s4635_s3 + $0x8] sm:$0xff] }
  0xff   : > { %v3410_v15 = vpop.f32.mrf.mxu0 }
 0x100   : > { %v3450_v20 = vpop.f32.mrf.mxu1  ;;  %v3411_v8 = vadd.f32 %v3410_v15, %v3409_v13 }
 0x101   : > { %v3412_v17 = vpop.f32.mrf.mxu0  ;;  %v3451_v14 = vadd.f32 %v3450_v20, %v4087_v18 }
 0x102   : > { %v4093_v23 = vpop.f32.mrf.mxu1  ;;  %v1124_v34 = vadd.f32 %v3411_v8, %v4106_v36 }
 0x103   : > { %v3413_v19 = vpop.f32.mrf.mxu0 }
 0x104   : > { %v3453_v26 = vpop.f32.mrf.mxu1  ;;  %v1189_v45 = vadd.f32 %v3451_v14, %v1124_v34 }
 0x105   : > { %v4089_v21 = vpop.f32.mrf.mxu0 }
 0x107   : > { %v4091_v22 = vpop.f32.mrf.mxu0 }
 0x108   : > { %v4099_v28 = vpop.f32.mrf.mxu1 }
 0x109   : > { %v4095_v24 = vpop.f32.mrf.mxu0 }
 0x10a   : > { %v4101_v31 = vpop.f32.mrf.mxu1 }
 0x10b   : > { %v4097_v25 = vpop.f32.mrf.mxu0  ;;  %v3457_v49 = vadd.f32 %v4101_v31, %v4099_v28  ;;  %v1343_v28 = vld [vmem:[%s4635_s3 + $0x10] sm:$0xff] }
 0x10c   : > { %v4108_v37 = vpop.f32.mrf.mxu1  ;;  %v3420_v18 = vadd.f32 %v4097_v25, %v4095_v24 }
 0x10d   : > { %v3477_v27 = vpop.f32.mrf.mxu0 }
 0x10e   : > { %v4112_v43 = vpop.f32.mrf.mxu1 }
 0x10f   : > { %v3478_v29 = vpop.f32.mrf.mxu0 }
 0x110   : > { %v3479_v47 = vadd.f32 %v3478_v29, %v3477_v27  ;;  %v1181_v27 = vadd.f32 %v3445_v60, %v1116_v59  ;;  %v1184_v29 = vadd.f32 %v3448_v1, %v1119_v0 }
 0x111   : > { %v3480_v30 = vpop.f32.mrf.mxu0 }
 0x112   : > { %v1238_v57 = vadd.f32 %v3479_v47, %v1173_v52 }
 0x113   : > { %v3481_v32 = vpop.f32.mrf.mxu0 }
 0x114   : > { %v3482_v48 = vadd.f32 %v3481_v32, %v3480_v30  ;;  %v3414_v30 = vadd.f32 %v3413_v19, %v3412_v17  ;;  %v3417_v17 = vadd.f32 %v4091_v22, %v4089_v21  ;;  %v1135_v21 = vadd.f32 %v3420_v18, %v4106_v36 }
 0x115   : > { %v3483_v33 = vpop.f32.mrf.mxu0  ;;  %v3460_v22 = vadd.f32 %v4112_v43, %v4108_v37 }
 0x116   : > { %v1241_v58 = vadd.f32 %v3482_v48, %v1176_v53  ;;  %v1132_v48 = vadd.f32 %v3417_v17, %v4106_v36 }
 0x117   : > { %v3484_v38 = vpop.f32.mrf.mxu0  ;;  %v1200_v37 = vadd.f32 %v3460_v22, %v1135_v21 }
 0x118   : > { %v3485_v6 = vadd.f32 %v3484_v38, %v3483_v33  ;;  %v1127_v33 = vadd.f32 %v3414_v30, %v4106_v36  ;;  %v3454_v38 = vadd.f32 %v3453_v26, %v4093_v23  ;;  %v1197_v36 = vadd.f32 %v3457_v49, %v1132_v48 }
 0x119   : > { %v3486_v39 = vpop.f32.mrf.mxu0 }
 0x11a   : > { %v1246_v12 = vadd.f32 %v3485_v6, %v1181_v27  ;;  %v1192_v46 = vadd.f32 %v3454_v38, %v1127_v33 }
 0x11b   : > { %v3487_v44 = vpop.f32.mrf.mxu0 }
 0x11c   : > { %v3488_v7 = vadd.f32 %v3487_v44, %v3486_v39 }
 0x11d   : > { %v3489_v50 = vpop.f32.mrf.mxu0 }
 0x11e   : > { %v1302_v51 = vpop.f32.mrf.mxu1  ;;  %v1249_v32 = vadd.f32 %v3488_v7, %v1184_v29  ;;  %v1346_v7 = vld [vmem:[%s4636_s4 + $0x8] sm:$0xff]  ;;  %v4175_v29 = vld [vmem:[%s4636_s4 + $0x18] sm:$0x3f] }
 0x11f   : > { %v3490_v55 = vpop.f32.mrf.mxu0  ;;  %v1303_v2 = vadd.f32 %v1302_v51, %v1238_v57  ;;  %v1344_v57 = vld [vmem:[%s4635_s3 + $0x18] sm:$0x3f] }
 0x120   : > { %v1304_v56 = vpop.f32.mrf.mxu1  ;;  %v3491_v40 = vadd.f32 %v3490_v55, %v3489_v50 }
 0x121   : > { %v3492_v61 = vpop.f32.mrf.mxu0 }
 0x122   : > { %v1305_v63 = vpop.f32.mrf.mxu1  ;;  %v1254_v47 = vadd.f32 %v3491_v40, %v1189_v45 }
 0x123   : > { %v1306_v3 = vadd.f32 %v1305_v63, %v1241_v58  ;;  %v3493_v4 = vpop.f32.mrf.mxu0 }
 0x124   : > { %v1307_v5 = vpop.f32.mrf.mxu1  ;;  %v3494_v42 = vadd.f32 %v3493_v4, %v3492_v61 }
 0x125   : > { %3702 = vtanh.f32 %v1306_v3  ;;  %v3495_v9 = vpop.f32.mrf.mxu0 }
 0x126   : > { %v1310_v11 = vpop.f32.mrf.mxu1  ;;  %3704 = vtanh.f32 %v1303_v2  ;;  %v1257_v23 = vadd.f32 %v3494_v42, %v1192_v46 }
 0x127   : > { %v3496_v16 = vpop.f32.mrf.mxu0  ;;  %v1311_v13 = vadd.f32 %v1310_v11, %v1246_v12  ;;  %v4181_v12 = vld [vmem:[%s4636_s4 + $0x10] sm:$0xff] }
 0x128   : > { %v1312_v10 = vpop.f32.mrf.mxu1  ;;  %v3497_v55 = vadd.f32 %v3496_v16, %v3495_v9  ;;  %v4170_v9 = vld [vmem:[%s4636_s4] sm:$0xff] }
 0x129   : > { %v3498_v19 = vpop.f32.mrf.mxu0 }
 0x12a   : > { %v1313_v35 = vpop.f32.mrf.mxu1  ;;  %v1262_v58 = vadd.f32 %v3497_v55, %v1197_v36 }
 0x12b   : > { %v1314_v15 = vadd.f32 %v1313_v35, %v1249_v32  ;;  %v3499_v50 = vpop.f32.mrf.mxu0 }
 0x12c   : > { %v1315_v39 = vpop.f32.mrf.mxu1  ;;  %v3500_v56 = vadd.f32 %v3499_v50, %v3498_v19 }
 0x12d   : > { %3706 = vtanh.f32 %v1314_v15 }
 0x12e   : > { %v1318_v44 = vpop.f32.mrf.mxu1  ;;  %3708 = vtanh.f32 %v1311_v13  ;;  %v1265_v59 = vadd.f32 %v3500_v56, %v1200_v37 }
 0x12f   : > { %v1319_v52 = vadd.f32 %v1318_v44, %v1254_v47 }
 0x130   : > { %v1320_v20 = vpop.f32.mrf.mxu1 }
 0x132   : > { %v3703_v26 = vpop.eup %3702  ;;  %v1321_v51 = vpop.f32.mrf.mxu1 }
 0x133   : > { %v1322_v53 = vadd.f32 %v1321_v51, %v1257_v23  ;;  %3549 = vmatprep.subr.mxu0 %v3703_v26  ;;  %v3705_v24 = vpop.eup %3704 }
 0x134   : > { %v1323_v25 = vpop.f32.mrf.mxu1  ;;  %3550 = vmatpush3.msra.mxu0 %v3703_v26 }
 0x135   : > { %3710 = vtanh.f32 %v1322_v53  ;;  %3551 = vmatprep.subr.mxu0 %v3705_v24 }
 0x136   : > { %v1326_v31 = vpop.f32.mrf.mxu1  ;;  %3552 = vmatpush3.msra.mxu0 %v3705_v24  ;;  %3712 = vtanh.f32 %v1319_v52  ;;  %v4207_v52 = vld [vmem:[%s4637_s5 + $0x8] sm:$0xff] }
 0x137   : > { %3554 = vmatmul.mubr.msk.f32.vlgmr.msra.gmra.mxu0 %vm1349_vm1, %v1342_v54  ;;  %v1327_v63 = vadd.f32 %v1326_v31, %v1262_v58  ;;  %v2130_v58 = vld [vmem:[%s4639_s7 + $0x1e0] sm:$0xff] }
 0x138   : > { %v1328_v43 = vpop.f32.mrf.mxu1  ;;  %3556 = vmatprep.mubr.msk.f32.mxu0 %vm1349_vm1, %v1343_v28 }
 0x13a   : > { %v3707_v60 = vpop.eup %3706  ;;  %v1329_v61 = vpop.f32.mrf.mxu1 }
 0x13b   : > { %v1330_v0 = vadd.f32 %v1329_v61, %v1265_v59  ;;  %3557 = vmatmul.mubr.msk.f32.gmra.mxu0 %vm1349_vm1, %v1344_v57  ;;  %3559 = vmatprep.subr.mxu0 %v3707_v60  ;;  %v3709_v1 = vpop.eup %3708  ;;  %v2122_v61 = vld [vmem:[%s4639_s7 + $0x1a0] sm:$0xff] }
 0x13c   : > { %v1331_v2 = vpop.f32.mrf.mxu1  ;;  %3560 = vmatpush3.msra.mxu0 %v3707_v60  ;;  %3563 = vmatprep.mubr.msk.f32.mxu0 %vm1349_vm1, %v4081_v62  ;;  %v2118_v60 = vld [vmem:[%s4639_s7 + $0x180] sm:$0xff] }
 0x13d   : > { %3714 = vtanh.f32 %v1330_v0  ;;  %3561 = vmatprep.subr.mxu0 %v3709_v1 }
 0x13e   : > { %3562 = vmatpush3.msra.mxu0 %v3709_v1  ;;  %3716 = vtanh.f32 %v1327_v63 }
 0x13f   : > { %3564 = vmatmul.mubr.msk.f32.vlgmr.msra.gmra.mxu0 %vm1349_vm1, %v1342_v54 }
 0x140   : > { %3566 = vmatprep.mubr.msk.f32.mxu0 %vm1349_vm1, %v1343_v28 }
 0x142   : > { %v3711_v3 = vpop.eup %3710 }
 0x143   : > { %3567 = vmatmul.mubr.msk.f32.gmra.mxu0 %vm1349_vm1, %v1344_v57  ;;  %3569 = vmatprep.subr.mxu0 %v3711_v3  ;;  %v3713_v4 = vpop.eup %3712 }
 0x144   : > { %3570 = vmatpush3.msra.mxu0 %v3711_v3  ;;  %3573 = vmatprep.mubr.msk.f32.mxu0 %vm1349_vm1, %v4081_v62  ;;  %v4158_v62 = vld [vmem:[%s4637_s5] sm:$0xff]  ;;  %v3297_v3 = vcombine.high %v2118_v60, %v2122_v61 }
 0x145   : > { %3571 = vmatprep.subr.mxu0 %v3713_v4 }
 0x146   : > { %3572 = vmatpush3.msra.mxu0 %v3713_v4  ;;  %v2110_v4 = vld [vmem:[%s4639_s7 + $0x140] sm:$0xff] }
 0x147   : > { %3574 = vmatmul.mubr.msk.f32.vlgmr.msra.gmra.mxu0 %vm1349_vm1, %v1342_v54 }
 0x148   : > { %3576 = vmatprep.mubr.msk.f32.mxu0 %vm1349_vm1, %v1343_v28 }
 0x14a   : > { %v3715_v5 = vpop.eup %3714 }
 0x14b   : > { %3577 = vmatmul.mubr.msk.f32.gmra.mxu0 %vm1349_vm1, %v1344_v57  ;;  %3579 = vmatprep.subr.mxu1 %v3715_v5  ;;  %v3717_v6 = vpop.eup %3716 }
 0x14c   : > { %3580 = vmatpush3.msra.mxu1 %v3715_v5  ;;  %3597 = vmatprep.mubr.msk.f32.mxu0 %vm1738_vm2, %v4158_v62  ;;  %v2114_v5 = vld [vmem:[%s4639_s7 + $0x160] sm:$0xff] }
 0x14d   : > { %3581 = vmatprep.subr.mxu1 %v3717_v6 }
 0x14e   : > { %3582 = vmatpush3.msra.mxu1 %v3717_v6 }
 0x14f   : > { %3584 = vmatmul.mubr.msk.f32.vlgmr.msra.gmra.mxu1 %vm1349_vm1, %v1342_v54 }
 0x150   : > { %3586 = vmatprep.mubr.msk.f32.mxu1 %vm1349_vm1, %v1343_v28 }
 0x153   : > { %3587 = vmatmul.mubr.msk.f32.gmra.mxu1 %vm1349_vm1, %v1344_v57  ;;  %v2126_v57 = vld [vmem:[%s4639_s7 + $0x1c0] sm:$0xff] }
 0x154   : > { %3608 = vmatprep.mubr.msk.f32.mxu1 %vm1738_vm2, %v4158_v62  ;;  %v3305_v0 = vcombine.high %v2126_v57, %v2130_v58  ;;  %v3304_v1 = vcombine.low %v2126_v57, %v2130_v58  ;;  %v2075_v58 = vld [vmem:[%s4639_s7 + $0x28] sm:$0xff] }
 0x1f7   : > { %v3555_v8 = vpop.f32.mrf.mxu0 }
 0x1f8   : > { %v1434_v11 = vadd.f32 %v3555_v8, %v1346_v7  ;;  %v3296_v8 = vcombine.low %v2118_v60, %v2122_v61 }
 0x1f9   : > { %v1428_v27 = vpop.f32.mrf.mxu0 }
 0x1fa   : > { %3718 = vtanh.f32 %v1434_v11  ;;  %v1429_v30 = vadd.f32 %v1428_v27, %v4170_v9  ;;  %v2123_v11 = vld [vmem:[%s4639_s7 + $0x1a8] sm:$0xff]  ;;  %v3289_v27 = vcombine.high %v2110_v4, %v2114_v5 }
 0x1fb   : > { %v3558_v10 = vpop.f32.mrf.mxu0 }
 0x1fc   : > { %3720 = vtanh.f32 %v1429_v30  ;;  %v1444_v32 = vadd.f32 %v3558_v10, %v4175_v29 }
 0x1fd   : > { %v1438_v34 = vpop.f32.mrf.mxu0 }
 0x1fe   : > { %3722 = vtanh.f32 %v1444_v32  ;;  %v1439_v14 = vadd.f32 %v1438_v34, %v4181_v12  ;;  %v2111_v32 = vld [vmem:[%s4639_s7 + $0x148] sm:$0xff] }
 0x1ff   : > { %v3565_v16 = vpop.f32.mrf.mxu0  ;;  %v2115_v34 = vld [vmem:[%s4639_s7 + $0x168] sm:$0xff] }
 0x200   : > { %3724 = vtanh.f32 %v1439_v14  ;;  %v1519_v35 = vadd.f32 %v3565_v16, %v1346_v7  ;;  %v3291_v16 = vcombine.high %v2111_v32, %v2115_v34 }
 0x201   : > { %v1513_v33 = vpop.f32.mrf.mxu0 }
 0x202   : > { %3726 = vtanh.f32 %v1519_v35  ;;  %v1514_v38 = vadd.f32 %v1513_v33, %v4170_v9  ;;  %v3290_v35 = vcombine.low %v2111_v32, %v2115_v34  ;;  %v2102_v33 = vld [vmem:[%s4639_s7 + $0x100] sm:$0xff]  ;;  %v2120_v32 = vld [vmem:[%s4639_s7 + $0x190] sm:$0xff] }
 0x203   : > { %v3568_v13 = vpop.f32.mrf.mxu0 }
 0x204   : > { %3728 = vtanh.f32 %v1514_v38  ;;  %v1529_v15 = vadd.f32 %v3568_v13, %v4175_v29  ;;  %v2106_v38 = vld [vmem:[%s4639_s7 + $0x120] sm:$0xff]  ;;  %v2103_v13 = vld [vmem:[%s4639_s7 + $0x108] sm:$0xff] }
 0x205   : > { %v1523_v39 = vpop.f32.mrf.mxu0 }
 0x206   : > { %3730 = vtanh.f32 %v1529_v15  ;;  %v1524_v40 = vadd.f32 %v1523_v39, %v4181_v12  ;;  %v3281_v15 = vcombine.high %v2102_v33, %v2106_v38  ;;  %v2107_v39 = vld [vmem:[%s4639_s7 + $0x128] sm:$0xff] }
 0x207   : > { %v3719_v42 = vpop.eup %3718  ;;  %v3575_v17 = vpop.f32.mrf.mxu0 }
 0x208   : > { %1719 = vst [vmem:[%s4191_s26 + $0x8] sm:$0xff] %v3719_v42  ;;  %3732 = vtanh.f32 %v1524_v40  ;;  %v1604_v19 = vadd.f32 %v3575_v17, %v1346_v7  ;;  %v3280_v40 = vcombine.low %v2102_v33, %v2106_v38  ;;  %v3283_v17 = vcombine.high %v2103_v13, %v2107_v39 }
 0x209   : > { %v3721_v44 = vpop.eup %3720  ;;  %v1598_v45 = vpop.f32.mrf.mxu0 }
 0x20a   : > { %1718 = vst [vmem:[%s4191_s26] sm:$0xff] %v3721_v44  ;;  %3734 = vtanh.f32 %v1604_v19  ;;  %v1599_v46 = vadd.f32 %v1598_v45, %v4170_v9  ;;  %v2094_v19 = vld [vmem:[%s4639_s7 + $0xc0] sm:$0xff] }
 0x20b   : > { %v3723_v18 = vpop.eup %3722  ;;  %v3578_v20 = vpop.f32.mrf.mxu0 }
 0x20c   : > { %1721 = vst [vmem:[%s4191_s26 + $0x18] sm:$0x3f] %v3723_v18  ;;  %3736 = vtanh.f32 %v1599_v46  ;;  %v1614_v47 = vadd.f32 %v3578_v20, %v4175_v29  ;;  %3589 = vmatprep.subr.msk.mxu0 %vm1745_vm3, %v3723_v18  ;;  %v2095_v46 = vld [vmem:[%s4639_s7 + $0xc8] sm:$0xff] }
 0x20d   : > { %v3725_v23 = vpop.eup %3724  ;;  %v1608_v26 = vpop.f32.mrf.mxu0  ;;  %3590 = vmatpush3.msk.msra.mxu0 %vm1745_vm3, %v3723_v18  ;;  %v2099_v18 = vld [vmem:[%s4639_s7 + $0xe8] sm:$0xff] }
 0x20e   : > { %1720 = vst [vmem:[%s4191_s26 + $0x10] sm:$0xff] %v3725_v23  ;;  %3738 = vtanh.f32 %v1614_v47  ;;  %v1609_v48 = vadd.f32 %v1608_v26, %v4181_v12  ;;  %3591 = vmatprep.subr.mxu0 %v3725_v23  ;;  %v3274_v47 = vcombine.low %v2095_v46, %v2099_v18  ;;  %v2086_v26 = vld [vmem:[%s4639_s7 + $0x80] sm:$0xff] }
 0x20f   : > { %v3727_v49 = vpop.eup %3726  ;;  %v3585_v50 = vpop.f32.mrf.mxu1  ;;  %3592 = vmatpush3.msra.mxu0 %v3725_v23  ;;  %v3275_v23 = vcombine.high %v2095_v46, %v2099_v18  ;;  %v2117_v46 = vld [vmem:[%s4639_s7 + $0x178] sm:$0xff] }
 0x210   : > { %1723 = vst [vmem:[%s4191_s26 + $0x28] sm:$0xff] %v3727_v49  ;;  %3740 = vtanh.f32 %v1609_v48  ;;  %v1689_v51 = vadd.f32 %v3585_v50, %v1346_v7  ;;  %3593 = vmatprep.subr.mxu0 %v3719_v42  ;;  %v2131_v7 = vld [vmem:[%s4639_s7 + $0x1e8] sm:$0xff]  ;;  %v2090_v48 = vld [vmem:[%s4639_s7 + $0xa0] sm:$0xff] }
 0x211   : > { %v3729_v21 = vpop.eup %3728  ;;  %v1683_v22 = vpop.f32.mrf.mxu1  ;;  %3594 = vmatpush3.msra.mxu0 %v3719_v42  ;;  %v3282_v42 = vcombine.low %v2103_v13, %v2107_v39  ;;  %v3265_v50 = vcombine.high %v2086_v26, %v2090_v48 }
 0x212   : > { %1722 = vst [vmem:[%s4191_s26 + $0x20] sm:$0xff] %v3729_v21  ;;  %3742 = vtanh.f32 %v1689_v51  ;;  %v1684_v53 = vadd.f32 %v1683_v22, %v4170_v9  ;;  %3595 = vmatprep.subr.mxu0 %v3721_v44  ;;  %v2119_v9 = vld [vmem:[%s4639_s7 + $0x188] sm:$0xff] }
 0x213   : > { %v3731_v24 = vpop.eup %3730  ;;  %v3588_v25 = vpop.f32.mrf.mxu1  ;;  %3596 = vmatpush3.msra.mxu0 %v3721_v44  ;;  %v3299_v10 = vcombine.high %v2119_v9, %v2123_v11  ;;  %v3298_v14 = vcombine.low %v2119_v9, %v2123_v11  ;;  %v2098_v44 = vld [vmem:[%s4639_s7 + $0xe0] sm:$0xff]  ;;  %v2091_v51 = vld [vmem:[%s4639_s7 + $0xa8] sm:$0xff] }
 0x214   : > { %1725 = vst [vmem:[%s4191_s26 + $0x38] sm:$0x3f] %v3731_v24  ;;  %3744 = vtanh.f32 %v1684_v53  ;;  %v1699_v54 = vadd.f32 %v3588_v25, %v4175_v29  ;;  %3598 = vmatmul.mubr.msk.f32.vlgmr.msra.gmra.mxu0 %vm1738_vm2, %v4207_v52  ;;  %3600 = vmatprep.subr.msk.mxu1 %vm1745_vm3, %v3731_v24  ;;  %v3273_v45 = vcombine.high %v2094_v19, %v2098_v44  ;;  %v2078_v53 = vld [vmem:[%s4639_s7 + $0x40] sm:$0xff]  ;;  %v2079_v25 = vld [vmem:[%s4639_s7 + $0x48] sm:$0xff] }
 0x215   : > { %v3733_v55 = vpop.eup %3732  ;;  %v1693_v56 = vpop.f32.mrf.mxu1  ;;  %3601 = vmatpush3.msk.msra.mxu1 %vm1745_vm3, %v3731_v24  ;;  %3619 = vmatprep.mubr.msk.f32.mxu0 %vm1738_vm2, %v4158_v62  ;;  %v3272_v20 = vcombine.low %v2094_v19, %v2098_v44  ;;  %v2082_v24 = vld [vmem:[%s4639_s7 + $0x60] sm:$0xff]  ;;  %v2112_v19 = vld [vmem:[%s4639_s7 + $0x150] sm:$0xff] }
 0x216   : > { %1724 = vst [vmem:[%s4191_s26 + $0x30] sm:$0xff] %v3733_v55  ;;  %3746 = vtanh.f32 %v1699_v54  ;;  %v1694_v28 = vadd.f32 %v1693_v56, %v4181_v12  ;;  %3602 = vmatprep.subr.mxu1 %v3733_v55  ;;  %v3288_v12 = vcombine.low %v2110_v4, %v2114_v5  ;;  %v3257_v54 = vcombine.high %v2078_v53, %v2082_v24  ;;  %v2116_v44 = vld [vmem:[%s4639_s7 + $0x170] sm:$0xff] }
 0x217   : > { %v3735_v31 = vpop.eup %3734  ;;  %3603 = vmatpush3.msra.mxu1 %v3733_v55  ;;  %v2083_v55 = vld [vmem:[%s4639_s7 + $0x68] sm:$0xff]  ;;  %v3256_v56 = vcombine.low %v2078_v53, %v2082_v24  ;;  %v3292_v24 = vcombine.low %v2112_v19, %v2116_v44 }
 0x218   : > { %1727 = vst [vmem:[%s4191_s26 + $0x48] sm:$0xff] %v3735_v31  ;;  %3748 = vtanh.f32 %v1694_v28  ;;  %3604 = vmatprep.subr.mxu1 %v3727_v49  ;;  %v3258_v28 = vcombine.low %v2079_v25, %v2083_v55 }
 0x219   : > { %v3737_v36 = vpop.eup %3736  ;;  %3605 = vmatpush3.msra.mxu1 %v3727_v49  ;;  %v2087_v49 = vld [vmem:[%s4639_s7 + $0x88] sm:$0xff] }
 0x21a   : > { %1726 = vst [vmem:[%s4191_s26 + $0x40] sm:$0xff] %v3737_v36  ;;  %3606 = vmatprep.subr.mxu1 %v3729_v21  ;;  %v3266_v22 = vcombine.low %v2087_v49, %v2091_v51 }
 0x21b   : > { %v3739_v37 = vpop.eup %3738  ;;  %3607 = vmatpush3.msra.mxu1 %v3729_v21  ;;  %v3264_v21 = vcombine.low %v2086_v26, %v2090_v48  ;;  %v2104_v26 = vld [vmem:[%s4639_s7 + $0x110] sm:$0xff] }
 0x21c   : > { %1729 = vst [vmem:[%s4191_s26 + $0x58] sm:$0x3f] %v3739_v37  ;;  %3609 = vmatmul.mubr.msk.f32.vlgmr.msra.gmra.mxu1 %vm1738_vm2, %v4207_v52  ;;  %3611 = vmatprep.subr.msk.mxu0 %vm1745_vm3, %v3739_v37  ;;  %v2108_v48 = vld [vmem:[%s4639_s7 + $0x130] sm:$0xff] }
 0x21d   : > { %v3741_v43 = vpop.eup %3740  ;;  %3612 = vmatpush3.msk.msra.mxu0 %vm1745_vm3, %v3739_v37  ;;  %3630 = vmatprep.mubr.msk.f32.mxu1 %vm1738_vm2, %v4158_v62  ;;  %v2127_v62 = vld [vmem:[%s4639_s7 + $0x1c8] sm:$0xff]  ;;  %v2074_v37 = vld [vmem:[%s4639_s7 + $0x20] sm:$0xff] }
 0x21e   : > { %1728 = vst [vmem:[%s4191_s26 + $0x50] sm:$0xff] %v3741_v43  ;;  %3613 = vmatprep.subr.mxu0 %v3741_v43  ;;  %v3307_v29 = vcombine.high %v2127_v62, %v2131_v7  ;;  %v3306_v30 = vcombine.low %v2127_v62, %v2131_v7  ;;  %v1737_v62 = vld [vmem:[%s4638_s6 + $0x8] sm:$0xff] }
 0x21f   : > { %v3743_v59 = vpop.eup %3742  ;;  %3614 = vmatpush3.msra.mxu0 %v3741_v43  ;;  %v2071_v43 = vld [vmem:[%s4639_s7 + $0x8] sm:$0xff] }
 0x220   : > { %1731 = vst [vmem:[%s4191_s26 + $0x68] sm:$0xff] %v3743_v59  ;;  %3615 = vmatprep.subr.mxu0 %v3735_v31  ;;  %v3250_v60 = vcombine.low %v2071_v43, %v2075_v58  ;;  %v3251_v61 = vcombine.high %v2071_v43, %v2075_v58  ;;  %v2101_v43 = vld [vmem:[%s4639_s7 + $0xf8] sm:$0xff] }
 0x221   : > { %v3745_v63 = vpop.eup %3744  ;;  %3616 = vmatpush3.msra.mxu0 %v3735_v31  ;;  %v3259_v31 = vcombine.high %v2079_v25, %v2083_v55 }
 0x222   : > { %1730 = vst [vmem:[%s4191_s26 + $0x60] sm:$0xff] %v3745_v63  ;;  %3617 = vmatprep.subr.mxu0 %v3737_v36 }
 0x223   : > { %v3747_v2 = vpop.eup %3746  ;;  %3618 = vmatpush3.msra.mxu0 %v3737_v36  ;;  %v2070_v36 = vld [vmem:[%s4639_s7] sm:$0xff] }
 0x224   : > { %1733 = vst [vmem:[%s4191_s26 + $0x78] sm:$0x3f] %v3747_v2  ;;  %3620 = vmatmul.mubr.msk.f32.vlgmr.msra.gmra.mxu0 %vm1738_vm2, %v4207_v52  ;;  %3622 = vmatprep.subr.msk.mxu1 %vm1745_vm3, %v3747_v2  ;;  %v3249_v57 = vcombine.high %v2070_v36, %v2074_v37 }
 0x225   : > { %v3749_v6 = vpop.eup %3748  ;;  %3623 = vmatpush3.msk.msra.mxu1 %vm1745_vm3, %v3747_v2  ;;  %2496 = vmatprep.subr.bf16.mxu0 %v3305_v0  ;;  %v2132_v0 = vld [vmem:[%s4639_s7 + $0x1f0] sm:$0xff] }
 0x226   : > { %1732 = vst [vmem:[%s4191_s26 + $0x70] sm:$0xff] %v3749_v6  ;;  %3624 = vmatprep.subr.mxu1 %v3749_v6  ;;  %2497 = vmatpush1.bf16.msra.mxu0 %v3304_v1  ;;  %v2129_v1 = vld [vmem:[%s4639_s7 + $0x1d8] sm:$0xff] }
 0x227   : > { %3625 = vmatpush3.msra.mxu1 %v3749_v6  ;;  %2498 = vmatprep.subr.bf16.mxu0 %v3297_v3  ;;  %v2133_v3 = vld [vmem:[%s4639_s7 + $0x1f8] sm:$0xff] }
 0x228   : > { %3626 = vmatprep.subr.mxu1 %v3743_v59  ;;  %2528 = vmatprep.mubr.bf16.mxu0 %v3774_v41  ;;  %v3310_v5 = vcombine.low %v2129_v1, %v2133_v3  ;;  %v3311_v6 = vcombine.high %v2129_v1, %v2133_v3  ;;  %v2093_v1 = vld [vmem:[%s4639_s7 + $0xb8] sm:$0xff] }
 0x229   : > { %3627 = vmatpush3.msra.mxu1 %v3743_v59  ;;  %v3248_v59 = vcombine.low %v2070_v36, %v2074_v37  ;;  %v2100_v36 = vld [vmem:[%s4639_s7 + $0xf0] sm:$0xff]  ;;  %v2097_v37 = vld [vmem:[%s4639_s7 + $0xd8] sm:$0xff] }
 0x22a   : > { %3628 = vmatprep.subr.mxu1 %v3745_v63  ;;  %2499 = vmatpush1.bf16.msra.mxu0 %v3296_v8  ;;  %v1736_v8 = vld [vmem:[%s4638_s6] sm:$0xff] }
 0x22b   : > { %3629 = vmatpush3.msra.mxu1 %v3745_v63  ;;  %2500 = vmatprep.subr.bf16.mxu0 %v3289_v27  ;;  %v2128_v63 = vld [vmem:[%s4639_s7 + $0x1d0] sm:$0xff] }
 0x22c   : > { %3631 = vmatmul.mubr.msk.f32.vlgmr.msra.gmra.mxu1 %vm1738_vm2, %v4207_v52  ;;  %2569 = vmatprep.subr.bf16.mxu1 %v3307_v29  ;;  %v3267_v52 = vcombine.high %v2087_v49, %v2091_v51  ;;  %v3309_v2 = vcombine.high %v2128_v63, %v2132_v0  ;;  %v3308_v4 = vcombine.low %v2128_v63, %v2132_v0  ;;  %v2109_v51 = vld [vmem:[%s4639_s7 + $0x138] sm:$0xff]  ;;  %v2092_v63 = vld [vmem:[%s4639_s7 + $0xb0] sm:$0xff] }
 0x22d   : > { %2570 = vmatpush1.bf16.msra.mxu1 %v3306_v30  ;;  %2601 = vmatprep.mubr.bf16.mxu1 %v3774_v41  ;;  %v2089_v0 = vld [vmem:[%s4639_s7 + $0x98] sm:$0xff] }
 0x22e   : > { %2571 = vmatprep.subr.bf16.mxu1 %v3299_v10  ;;  %2501 = vmatpush1.bf16.msra.mxu0 %v3288_v12 }
 0x22f   : > { %2502 = vmatprep.subr.bf16.mxu0 %v3281_v15 }
 0x231   : > { %2572 = vmatpush1.bf16.msra.mxu1 %v3298_v14  ;;  %v2124_v14 = vld [vmem:[%s4639_s7 + $0x1b0] sm:$0xff] }
 0x232   : > { %2573 = vmatprep.subr.bf16.mxu1 %v3291_v16  ;;  %2503 = vmatpush1.bf16.msra.mxu0 %v3280_v40  ;;  %v2121_v16 = vld [vmem:[%s4639_s7 + $0x198] sm:$0xff]  ;;  %v3300_v18 = vcombine.low %v2120_v32, %v2124_v14 }
 0x233   : > { %2504 = vmatprep.subr.bf16.mxu0 %v3273_v45  ;;  %v2113_v45 = vld [vmem:[%s4639_s7 + $0x158] sm:$0xff] }
 0x234   : > { %v3294_v25 = vcombine.low %v2113_v45, %v2117_v46 }
 0x235   : > { %2574 = vmatpush1.bf16.msra.mxu1 %v3290_v35  ;;  %v2125_v35 = vld [vmem:[%s4639_s7 + $0x1b8] sm:$0xff] }
 0x236   : > { %2575 = vmatprep.subr.bf16.mxu1 %v3283_v17  ;;  %2505 = vmatpush1.bf16.msra.mxu0 %v3272_v20  ;;  %v3303_v17 = vcombine.high %v2121_v16, %v2125_v35  ;;  %v3302_v20 = vcombine.low %v2121_v16, %v2125_v35  ;;  %v2077_v16 = vld [vmem:[%s4639_s7 + $0x38] sm:$0xff] }
 0x237   : > { %2506 = vmatprep.subr.bf16.mxu0 %v3265_v50  ;;  %v2105_v50 = vld [vmem:[%s4639_s7 + $0x118] sm:$0xff] }
 0x238   : > { %v3286_v58 = vcombine.low %v2105_v50, %v2109_v51 }
 0x239   : > { %2576 = vmatpush1.bf16.msra.mxu1 %v3282_v42  ;;  %v3301_v42 = vcombine.high %v2120_v32, %v2124_v14  ;;  %v2072_v32 = vld [vmem:[%s4639_s7 + $0x10] sm:$0xff]  ;;  %v2073_v14 = vld [vmem:[%s4639_s7 + $0x18] sm:$0xff] }
 0x23a   : > { %2577 = vmatprep.subr.bf16.mxu1 %v3275_v23  ;;  %2507 = vmatpush1.bf16.msra.mxu0 %v3264_v21  ;;  %v3295_v23 = vcombine.high %v2113_v45, %v2117_v46 }
 0x23b   : > { %2508 = vmatprep.subr.bf16.mxu0 %v3257_v54  ;;  %v3285_v54 = vcombine.high %v2104_v26, %v2108_v48 }
 0x23d   : > { %2578 = vmatpush1.bf16.msra.mxu1 %v3274_v47  ;;  %v3293_v47 = vcombine.high %v2112_v19, %v2116_v44  ;;  %v3254_v19 = vcombine.low %v2073_v14, %v2077_v16 }
 0x23e   : > { %2579 = vmatprep.subr.bf16.mxu1 %v3267_v52  ;;  %2509 = vmatpush1.bf16.msra.mxu0 %v3256_v56 }
 0x23f   : > { %2510 = vmatprep.subr.bf16.mxu0 %v3249_v57  ;;  %v3284_v57 = vcombine.low %v2104_v26, %v2108_v48 }
 0x241   : > { %2580 = vmatpush1.bf16.msra.mxu1 %v3266_v22 }
 0x242   : > { %2581 = vmatprep.subr.bf16.mxu1 %v3259_v31  ;;  %2511 = vmatpush1.bf16.msra.mxu0 %v3248_v59  ;;  %v2096_v31 = vld [vmem:[%s4639_s7 + $0xd0] sm:$0xff] }
 0x243   : > { %2642 = vmatprep.subr.bf16.mxu0 %v3309_v2  ;;  %v3277_v59 = vcombine.high %v2096_v31, %v2100_v36 }
 0x245   : > { %2582 = vmatpush1.bf16.msra.mxu1 %v3258_v28  ;;  %v3287_v28 = vcombine.high %v2105_v50, %v2109_v51 }
 0x246   : > { %2583 = vmatprep.subr.bf16.mxu1 %v3251_v61  ;;  %v2088_v61 = vld [vmem:[%s4639_s7 + $0x90] sm:$0xff] }
 0x249   : > { %2584 = vmatpush1.bf16.msra.mxu1 %v3250_v60  ;;  %v3279_v60 = vcombine.high %v2097_v37, %v2101_v43 }
 0x24a   : > { %2715 = vmatprep.subr.bf16.mxu1 %v3311_v6 }
 0x2d4   : > { %v3599_v7 = vpop.f32.mrf.mxu0 }
 0x2d5   : > { %v1821_v9 = vadd.f32 %v3599_v7, %v1737_v62  ;;  %v3271_v7 = vcombine.high %v2089_v0, %v2093_v1 }
 0x2d6   : > { %v1815_v11 = vpop.f32.mrf.mxu0 }
 0x2d7   : > { %v1816_v27 = vadd.f32 %v1815_v11, %v1736_v8  ;;  %3750 = vtanh.f32 %v1821_v9  ;;  %v2084_v9 = vld [vmem:[%s4639_s7 + $0x70] sm:$0xff]  ;;  %v2081_v11 = vld [vmem:[%s4639_s7 + $0x58] sm:$0xff] }
 0x2d9   : > { %3752 = vtanh.f32 %v1816_v27  ;;  %v2085_v27 = vld [vmem:[%s4639_s7 + $0x78] sm:$0xff] }
 0x2dc   : > { %v3610_v29 = vpop.f32.mrf.mxu1 }
 0x2dd   : > { %v1899_v30 = vadd.f32 %v3610_v29, %v1737_v62  ;;  %v3268_v29 = vcombine.low %v2088_v61, %v2092_v63 }
 0x2de   : > { %v1893_v10 = vpop.f32.mrf.mxu1 }
 0x2df   : > { %v1894_v12 = vadd.f32 %v1893_v10, %v1736_v8  ;;  %3754 = vtanh.f32 %v1899_v30  ;;  %v3270_v30 = vcombine.low %v2089_v0, %v2093_v1 }
 0x2e1   : > { %3756 = vtanh.f32 %v1894_v12  ;;  %v3263_v12 = vcombine.high %v2081_v11, %v2085_v27 }
 0x2e4   : > { %v3621_v34 = vpop.f32.mrf.mxu0  ;;  %v3751_v33 = vpop.eup %3750 }
 0x2e5   : > { %v1977_v38 = vadd.f32 %v3621_v34, %v1737_v62  ;;  %v2076_v34 = vld [vmem:[%s4639_s7 + $0x30] sm:$0xff] }
 0x2e6   : > { %v3753_v13 = vpop.eup %3752  ;;  %v1971_v15 = vpop.f32.mrf.mxu0 }
 0x2e7   : > { %v1972_v39 = vadd.f32 %v1971_v15, %v1736_v8  ;;  %v4369_v40 = vpack.c.bf16 %v3751_v33, %v3753_v13  ;;  %3758 = vtanh.f32 %v1977_v38  ;;  %v3262_v13 = vcombine.low %v2081_v11, %v2085_v27 }
 0x2e9   : > { %3760 = vtanh.f32 %v1972_v39  ;;  %2529 = vmatmul.mubr.bf16.vlgmr.msra.gmra.mxu0 %v4369_v40  ;;  %2602 = vmatmul.mubr.bf16.vlgmr.msra.gmra.mxu1 %v4369_v40  ;;  %v3253_v39 = vcombine.high %v2072_v32, %v2076_v34 }
 0x2ea   : > { %2643 = vmatpush1.bf16.msra.mxu0 %v3308_v4  ;;  %2716 = vmatpush1.bf16.msra.mxu1 %v3310_v5  ;;  %v3276_v4 = vcombine.low %v2096_v31, %v2100_v36  ;;  %v3278_v5 = vcombine.low %v2097_v37, %v2101_v43 }
 0x2eb   : > { %2644 = vmatprep.subr.bf16.mxu0 %v3301_v42  ;;  %2717 = vmatprep.subr.bf16.mxu1 %v3303_v17  ;;  %v3255_v42 = vcombine.high %v2073_v14, %v2077_v16  ;;  %v3252_v17 = vcombine.low %v2072_v32, %v2076_v34 }
 0x2ec   : > { %v3632_v49 = vpop.f32.mrf.mxu1  ;;  %2538 = vmatprep.mubr.bf16.mxu0 %v3774_v41  ;;  %2611 = vmatprep.mubr.bf16.mxu1 %v3774_v41  ;;  %v3755_v21 = vpop.eup %3754 }
 0x2ed   : > { %v2055_v22 = vadd.f32 %v3632_v49, %v1737_v62  ;;  %v3269_v62 = vcombine.high %v2088_v61, %v2092_v63 }
 0x2ee   : > { %v3757_v52 = vpop.eup %3756  ;;  %v2049_v53 = vpop.f32.mrf.mxu1  ;;  %2645 = vmatpush1.bf16.msra.mxu0 %v3300_v18  ;;  %2718 = vmatpush1.bf16.msra.mxu1 %v3302_v20 }
 0x2ef   : > { %v2050_v55 = vadd.f32 %v2049_v53, %v1736_v8  ;;  %v4399_v56 = vpack.c.bf16 %v3755_v21, %v3757_v52  ;;  %2646 = vmatprep.subr.bf16.mxu0 %v3293_v47  ;;  %2719 = vmatprep.subr.bf16.mxu1 %v3295_v23  ;;  %3762 = vtanh.f32 %v2055_v22  ;;  %v2080_v8 = vld [vmem:[%s4639_s7 + $0x50] sm:$0xff]  ;;  %v4476_v47 = vld [vmem:[%s4640_s8] sm:$0xff] }
 0x2f0   : > { %v3261_v10 = vcombine.high %v2080_v8, %v2084_v9  ;;  %v3260_v38 = vcombine.low %v2080_v8, %v2084_v9 }
 0x2f1   : > { %3764 = vtanh.f32 %v2050_v55  ;;  %2539 = vmatmul.mubr.bf16.gmra.mxu0 %v4399_v56  ;;  %2612 = vmatmul.mubr.bf16.gmra.mxu1 %v4399_v56 }
 0x2f2   : > { %2647 = vmatpush1.bf16.msra.mxu0 %v3292_v24  ;;  %2720 = vmatpush1.bf16.msra.mxu1 %v3294_v25 }
 0x2f3   : > { %2648 = vmatprep.subr.bf16.mxu0 %v3285_v54  ;;  %2721 = vmatprep.subr.bf16.mxu1 %v3287_v28 }
 0x2f4   : > { %2548 = vmatprep.mubr.bf16.mxu0 %v3774_v41  ;;  %2621 = vmatprep.mubr.bf16.mxu1 %v3774_v41  ;;  %v3759_v2 = vpop.eup %3758 }
 0x2f6   : > { %v3761_v3 = vpop.eup %3760  ;;  %2649 = vmatpush1.bf16.msra.mxu0 %v3284_v57  ;;  %2722 = vmatpush1.bf16.msra.mxu1 %v3286_v58 }
 0x2f7   : > { %v2068_v6 = vpack.c.bf16 %v3759_v2, %v3761_v3  ;;  %2650 = vmatprep.subr.bf16.mxu0 %v3277_v59  ;;  %2723 = vmatprep.subr.bf16.mxu1 %v3279_v60 }
 0x2f9   : > { %2549 = vmatmul.mubr.bf16.gmra.mxu0 %v2068_v6  ;;  %2622 = vmatmul.mubr.bf16.gmra.mxu1 %v2068_v6 }
 0x2fa   : > { %2651 = vmatpush1.bf16.msra.mxu0 %v3276_v4  ;;  %2724 = vmatpush1.bf16.msra.mxu1 %v3278_v5 }
 0x2fb   : > { %2652 = vmatprep.subr.bf16.mxu0 %v3269_v62  ;;  %2725 = vmatprep.subr.bf16.mxu1 %v3271_v7 }
 0x2fc   : > { %2558 = vmatprep.mubr.bf16.mxu0 %v3774_v41  ;;  %2631 = vmatprep.mubr.bf16.mxu1 %v3774_v41  ;;  %v3763_v35 = vpop.eup %3762 }
 0x2fe   : > { %v3765_v33 = vpop.eup %3764  ;;  %2653 = vmatpush1.bf16.msra.mxu0 %v3268_v29  ;;  %2726 = vmatpush1.bf16.msra.mxu1 %v3270_v30 }
 0x2ff   : > { %v2069_v15 = vpack.c.bf16 %v3763_v35, %v3765_v33  ;;  %2654 = vmatprep.subr.bf16.mxu0 %v3261_v10  ;;  %2727 = vmatprep.subr.bf16.mxu1 %v3263_v12 }
 0x301   : > { %2559 = vmatmul.mubr.bf16.gmra.mxu0 %v2069_v15  ;;  %2632 = vmatmul.mubr.bf16.gmra.mxu1 %v2069_v15 }
 0x302   : > { %2655 = vmatpush1.bf16.msra.mxu0 %v3260_v38  ;;  %2728 = vmatpush1.bf16.msra.mxu1 %v3262_v13 }
 0x303   : > { %2656 = vmatprep.subr.bf16.mxu0 %v3253_v39  ;;  %2729 = vmatprep.subr.bf16.mxu1 %v3255_v42 }
 0x304   : > { %2674 = vmatprep.mubr.bf16.mxu0 %v3774_v41  ;;  %2747 = vmatprep.mubr.bf16.mxu1 %v3774_v41 }
 0x306   : > { %2657 = vmatpush1.bf16.msra.mxu0 %v3252_v17  ;;  %2730 = vmatpush1.bf16.msra.mxu1 %v3254_v19 }
 0x309   : > { %2675 = vmatmul.mubr.bf16.vlgmr.msra.gmra.mxu0 %v4369_v40  ;;  %2748 = vmatmul.mubr.bf16.vlgmr.msra.gmra.mxu1 %v4369_v40  ;;  %v2136_v40 = vlaneseq }
 0x30a   : > { %2684 = vmatprep.mubr.bf16.mxu0 %v3774_v41  ;;  %2757 = vmatprep.mubr.bf16.mxu1 %v3774_v41 }
 0x30b   : > { %v4467_v44 = vshrl.u32 %v2136_v40, 7 }
 0x30d   : > { %v2138_v45 = vsub.s32 0, %v4467_v44  ;;  %v2146_v46 = vsub.s32 2, %v4467_v44  ;;  %v2142_v18 = vsub.s32 1, %v4467_v44  ;;  %v2150_v20 = vsub.s32 3, %v4467_v44 }
 0x30f   : > { %v4482_v23 = vrot.slane %v4476_v47, %v2146_v46  ;;  %v4485_v26 = vrot.slane %v4476_v47, %v2142_v18  ;;  %v4488_v48 = vrot.slane %v4476_v47, %v2150_v20 }
 0x311   : > { %2685 = vmatmul.mubr.bf16.gmra.mxu0 %v4399_v56  ;;  %2758 = vmatmul.mubr.bf16.gmra.mxu1 %v4399_v56 }
 0x312   : > { %2694 = vmatprep.mubr.bf16.mxu0 %v3774_v41  ;;  %2767 = vmatprep.mubr.bf16.mxu1 %v3774_v41 }
 0x319   : > { %2695 = vmatmul.mubr.bf16.gmra.mxu0 %v2068_v6  ;;  %2768 = vmatmul.mubr.bf16.gmra.mxu1 %v2068_v6 }
 0x31a   : > { %2704 = vmatprep.mubr.bf16.mxu0 %v3774_v41  ;;  %2777 = vmatprep.mubr.bf16.mxu1 %v3774_v41  ;;  %v4479_v41 = vrot.slane %v4476_v47, %v2138_v45 }
 0x321   : > { %2705 = vmatmul.mubr.bf16.gmra.mxu0 %v2069_v15  ;;  %2778 = vmatmul.mubr.bf16.gmra.mxu1 %v2069_v15 }
 0x3a9   : > { %v2530_v49 = vpop.f32.mrf.mxu0  ;;  %v2603_v50 = vpop.f32.mrf.mxu1 }
 0x3aa   : > { %v2531_v22 = vadd.f32 %v2530_v49, %v4479_v41  ;;  %v2604_v52 = vadd.f32 %v2603_v50, %v4482_v23 }
 0x3ab   : > { %v2532_v51 = vpop.f32.mrf.mxu0  ;;  %v2605_v21 = vpop.f32.mrf.mxu1 }
 0x3ac   : > { %v2533_v53 = vadd.f32 %v2532_v51, %v4485_v26  ;;  %v2606_v24 = vadd.f32 %v2605_v21, %v4488_v48 }
 0x3ad   : > { %v2534_v25 = vpop.f32.mrf.mxu0  ;;  %v2607_v54 = vpop.f32.mrf.mxu1 }
 0x3ae   : > { %v3349_v55 = vpack.c.bf16 %v2533_v53, %v2531_v22  ;;  %v3350_v56 = vpack.c.bf16 %v2606_v24, %v2604_v52  ;;  %v2535_v36 = vadd.f32 %v2534_v25, %v4479_v41  ;;  %v2608_v37 = vadd.f32 %v2607_v54, %v4482_v23 }
 0x3af   : > { %v2536_v28 = vpop.f32.mrf.mxu0  ;;  %v2609_v31 = vpop.f32.mrf.mxu1  ;;  %v2154_v53 = vsub.s32 4, %v4467_v44  ;;  %v2162_v24 = vsub.s32 6, %v4467_v44  ;;  %v2158_v25 = vsub.s32 5, %v4467_v44  ;;  %v2166_v54 = vsub.s32 7, %v4467_v44 }
 0x3b0   : > { %2980 = vst [vmem:[%s4499_s11] sm:$0xff] %v3349_v55  ;;  %2981 = vst [vmem:[%s4499_s11 + $0x8] sm:$0xff] %v3350_v56  ;;  %v2537_v43 = vadd.f32 %v2536_v28, %v4485_v26  ;;  %v2610_v57 = vadd.f32 %v2609_v31, %v4488_v48 }
 0x3b1   : > { %v2540_v58 = vpop.f32.mrf.mxu0  ;;  %v2613_v59 = vpop.f32.mrf.mxu1  ;;  %v4542_v44 = vrot.slane %v4476_v47, %v2154_v53 }
 0x3b2   : > { %v3353_v60 = vpack.c.bf16 %v2537_v43, %v2535_v36  ;;  %v3354_v61 = vpack.c.bf16 %v2610_v57, %v2608_v37  ;;  %v2541_v1 = vadd.f32 %v2540_v58, %v4479_v41  ;;  %v2614_v2 = vadd.f32 %v2613_v59, %v4482_v23 }
 0x3b3   : > { %v2542_v63 = vpop.f32.mrf.mxu0  ;;  %v2615_v0 = vpop.f32.mrf.mxu1 }
 0x3b4   : > { %2987 = vst [vmem:[%s4499_s11 + $0x20] sm:$0xff] %v3353_v60  ;;  %2988 = vst [vmem:[%s4499_s11 + $0x28] sm:$0xff] %v3354_v61  ;;  %v2543_v3 = vadd.f32 %v2542_v63, %v4485_v26  ;;  %v2616_v4 = vadd.f32 %v2615_v0, %v4488_v48  ;;  %v4545_v60 = vrot.slane %v4476_v47, %v2162_v24 }
 0x3b5   : > { %v2544_v5 = vpop.f32.mrf.mxu0  ;;  %v2617_v6 = vpop.f32.mrf.mxu1  ;;  %v4548_v61 = vrot.slane %v4476_v47, %v2158_v25  ;;  %v4551_v63 = vrot.slane %v4476_v47, %v2166_v54 }
 0x3b6   : > { %v3357_v62 = vpack.c.bf16 %v2543_v3, %v2541_v1  ;;  %v3358_v7 = vpack.c.bf16 %v2616_v4, %v2614_v2  ;;  %v2545_v11 = vadd.f32 %v2544_v5, %v4479_v41  ;;  %v2618_v27 = vadd.f32 %v2617_v6, %v4482_v23 }
 0x3b7   : > { %v2546_v8 = vpop.f32.mrf.mxu0  ;;  %v2619_v9 = vpop.f32.mrf.mxu1 }
 0x3b8   : > { %2991 = vst [vmem:[%s4499_s11 + $0x40] sm:$0xff] %v3357_v62  ;;  %2992 = vst [vmem:[%s4499_s11 + $0x48] sm:$0xff] %v3358_v7  ;;  %v2547_v29 = vadd.f32 %v2546_v8, %v4485_v26  ;;  %v2620_v30 = vadd.f32 %v2619_v9, %v4488_v48 }
 0x3b9   : > { %v2550_v10 = vpop.f32.mrf.mxu0  ;;  %v2623_v12 = vpop.f32.mrf.mxu1 }
 0x3ba   : > { %v3361_v32 = vpack.c.bf16 %v2547_v29, %v2545_v11  ;;  %v3362_v34 = vpack.c.bf16 %v2620_v30, %v2618_v27  ;;  %v2551_v35 = vadd.f32 %v2550_v10, %v4479_v41  ;;  %v2624_v33 = vadd.f32 %v2623_v12, %v4482_v23 }
 0x3bb   : > { %v2552_v14 = vpop.f32.mrf.mxu0  ;;  %v2625_v16 = vpop.f32.mrf.mxu1 }
 0x3bc   : > { %2995 = vst [vmem:[%s4499_s11 + $0x60] sm:$0xff] %v3361_v32  ;;  %2996 = vst [vmem:[%s4499_s11 + $0x68] sm:$0xff] %v3362_v34  ;;  %v2553_v38 = vadd.f32 %v2552_v14, %v4485_v26  ;;  %v2626_v13 = vadd.f32 %v2625_v16, %v4488_v48 }
 0x3bd   : > { %v2554_v15 = vpop.f32.mrf.mxu0  ;;  %v2627_v39 = vpop.f32.mrf.mxu1 }
 0x3be   : > { %v3365_v42 = vpack.c.bf16 %v2553_v38, %v2551_v35  ;;  %v3366_v17 = vpack.c.bf16 %v2626_v13, %v2624_v33  ;;  %v2555_v45 = vadd.f32 %v2554_v15, %v4479_v41  ;;  %v2628_v46 = vadd.f32 %v2627_v39, %v4482_v23 }
 0x3bf   : > { %v2556_v19 = vpop.f32.mrf.mxu0  ;;  %v2629_v40 = vpop.f32.mrf.mxu1 }
 0x3c0   : > { %2999 = vst [vmem:[%s4499_s11 + $0x80] sm:$0xff] %v3365_v42  ;;  %3000 = vst [vmem:[%s4499_s11 + $0x88] sm:$0xff] %v3366_v17  ;;  %v2557_v18 = vadd.f32 %v2556_v19, %v4485_v26  ;;  %v2630_v20 = vadd.f32 %v2629_v40, %v4488_v48 }
 0x3c1   : > { %v2560_v49 = vpop.f32.mrf.mxu0  ;;  %v2633_v50 = vpop.f32.mrf.mxu1 }
 0x3c2   : > { %v3369_v51 = vpack.c.bf16 %v2557_v18, %v2555_v45  ;;  %v3370_v21 = vpack.c.bf16 %v2630_v20, %v2628_v46  ;;  %v2561_v55 = vadd.f32 %v2560_v49, %v4479_v41  ;;  %v2634_v56 = vadd.f32 %v2633_v50, %v4482_v23 }
 0x3c3   : > { %v2562_v22 = vpop.f32.mrf.mxu0  ;;  %v2635_v52 = vpop.f32.mrf.mxu1 }
 0x3c4   : > { %3003 = vst [vmem:[%s4499_s11 + $0xa0] sm:$0xff] %v3369_v51  ;;  %3004 = vst [vmem:[%s4499_s11 + $0xa8] sm:$0xff] %v3370_v21  ;;  %v2563_v28 = vadd.f32 %v2562_v22, %v4485_v26  ;;  %v2636_v31 = vadd.f32 %v2635_v52, %v4488_v48 }
 0x3c5   : > { %v2564_v36 = vpop.f32.mrf.mxu0  ;;  %v2637_v37 = vpop.f32.mrf.mxu1 }
 0x3c6   : > { %v3373_v43 = vpack.c.bf16 %v2563_v28, %v2561_v55  ;;  %v3374_v57 = vpack.c.bf16 %v2636_v31, %v2634_v56  ;;  %v2565_v0 = vadd.f32 %v2564_v36, %v4479_v41  ;;  %v2638_v1 = vadd.f32 %v2637_v37, %v4482_v23 }
 0x3c7   : > { %v2566_v58 = vpop.f32.mrf.mxu0  ;;  %v2639_v59 = vpop.f32.mrf.mxu1 }
 0x3c8   : > { %3007 = vst [vmem:[%s4499_s11 + $0xc0] sm:$0xff] %v3373_v43  ;;  %3008 = vst [vmem:[%s4499_s11 + $0xc8] sm:$0xff] %v3374_v57  ;;  %v2567_v2 = vadd.f32 %v2566_v58, %v4485_v26  ;;  %v2640_v3 = vadd.f32 %v2639_v59, %v4488_v48 }
 0x3c9   : > { %v2676_v4 = vpop.f32.mrf.mxu0  ;;  %v2749_v5 = vpop.f32.mrf.mxu1 }
 0x3ca   : > { %v3377_v6 = vpack.c.bf16 %v2567_v2, %v2565_v0  ;;  %v3378_v62 = vpack.c.bf16 %v2640_v3, %v2638_v1  ;;  %v2677_v41 = vadd.f32 %v2676_v4, %v4542_v44  ;;  %v2750_v23 = vadd.f32 %v2749_v5, %v4545_v60 }
 0x3cb   : > { %v2678_v47 = vpop.f32.mrf.mxu0  ;;  %v2751_v7 = vpop.f32.mrf.mxu1 }
 0x3cc   : > { %3011 = vst [vmem:[%s4499_s11 + $0xe0] sm:$0xff] %v3377_v6  ;;  %3012 = vst [vmem:[%s4499_s11 + $0xe8] sm:$0xff] %v3378_v62  ;;  %v2679_v26 = vadd.f32 %v2678_v47, %v4548_v61  ;;  %v2752_v48 = vadd.f32 %v2751_v7, %v4551_v63 }
 0x3cd   : > { %v2680_v9 = vpop.f32.mrf.mxu0  ;;  %v2753_v11 = vpop.f32.mrf.mxu1 }
 0x3ce   : > { %v3351_v27 = vpack.c.bf16 %v2679_v26, %v2677_v41  ;;  %v3352_v29 = vpack.c.bf16 %v2752_v48, %v2750_v23  ;;  %v2681_v12 = vadd.f32 %v2680_v9, %v4542_v44  ;;  %v2754_v32 = vadd.f32 %v2753_v11, %v4545_v60 }
 0x3cf   : > { %v2682_v30 = vpop.f32.mrf.mxu0  ;;  %v2755_v10 = vpop.f32.mrf.mxu1 }
 0x3d0   : > { %2982 = vst [vmem:[%s4499_s11 + $0x10] sm:$0xff] %v3351_v27  ;;  %2986 = vst.msk [vmem:[%s4499_s11 + $0x18] sm:$0xff] %vm4565_vm6, %v3352_v29  ;;  %v2683_v34 = vadd.f32 %v2682_v30, %v4548_v61  ;;  %v2756_v14 = vadd.f32 %v2755_v10, %v4551_v63 }
 0x3d1   : > { %v2686_v16 = vpop.f32.mrf.mxu0  ;;  %v2759_v35 = vpop.f32.mrf.mxu1 }
 0x3d2   : > { %v3355_v33 = vpack.c.bf16 %v2683_v34, %v2681_v12  ;;  %v3356_v38 = vpack.c.bf16 %v2756_v14, %v2754_v32  ;;  %v2687_v39 = vadd.f32 %v2686_v16, %v4542_v44  ;;  %v2760_v42 = vadd.f32 %v2759_v35, %v4545_v60 }
 0x3d3   : > { %v2688_v13 = vpop.f32.mrf.mxu0  ;;  %v2761_v15 = vpop.f32.mrf.mxu1 }
 0x3d4   : > { %2989 = vst [vmem:[%s4499_s11 + $0x30] sm:$0xff] %v3355_v33  ;;  %2990 = vst.msk [vmem:[%s4499_s11 + $0x38] sm:$0xff] %vm4565_vm6, %v3356_v38  ;;  %v2689_v17 = vadd.f32 %v2688_v13, %v4548_v61  ;;  %v2762_v19 = vadd.f32 %v2761_v15, %v4551_v63 }
 0x3d5   : > { %v2690_v40 = vpop.f32.mrf.mxu0  ;;  %v2763_v45 = vpop.f32.mrf.mxu1 }
 0x3d6   : > { %v3359_v46 = vpack.c.bf16 %v2689_v17, %v2687_v39  ;;  %v3360_v18 = vpack.c.bf16 %v2762_v19, %v2760_v42  ;;  %v2691_v50 = vadd.f32 %v2690_v40, %v4542_v44  ;;  %v2764_v51 = vadd.f32 %v2763_v45, %v4545_v60 }
 0x3d7   : > { %v2692_v20 = vpop.f32.mrf.mxu0  ;;  %v2765_v49 = vpop.f32.mrf.mxu1 }
 0x3d8   : > { %2993 = vst [vmem:[%s4499_s11 + $0x50] sm:$0xff] %v3359_v46  ;;  %2994 = vst.msk [vmem:[%s4499_s11 + $0x58] sm:$0xff] %vm4565_vm6, %v3360_v18  ;;  %v2693_v21 = vadd.f32 %v2692_v20, %v4548_v61  ;;  %v2766_v22 = vadd.f32 %v2765_v49, %v4551_v63 }
 0x3d9   : > { %v2696_v52 = vpop.f32.mrf.mxu0  ;;  %v2769_v53 = vpop.f32.mrf.mxu1 }
 0x3da   : > { %v3363_v24 = vpack.c.bf16 %v2693_v21, %v2691_v50  ;;  %v3364_v25 = vpack.c.bf16 %v2766_v22, %v2764_v51  ;;  %v2697_v56 = vadd.f32 %v2696_v52, %v4542_v44  ;;  %v2770_v28 = vadd.f32 %v2769_v53, %v4545_v60 }
 0x3db   : > { %v2698_v54 = vpop.f32.mrf.mxu0  ;;  %v2771_v55 = vpop.f32.mrf.mxu1 }
 0x3dc   : > { %2997 = vst [vmem:[%s4499_s11 + $0x70] sm:$0xff] %v3363_v24  ;;  %2998 = vst.msk [vmem:[%s4499_s11 + $0x78] sm:$0xff] %vm4565_vm6, %v3364_v25  ;;  %v2699_v31 = vadd.f32 %v2698_v54, %v4548_v61  ;;  %v2772_v36 = vadd.f32 %v2771_v55, %v4551_v63 }
 0x3dd   : > { %v2700_v37 = vpop.f32.mrf.mxu0  ;;  %v2773_v43 = vpop.f32.mrf.mxu1 }
 0x3de   : > { %v3367_v57 = vpack.c.bf16 %v2699_v31, %v2697_v56  ;;  %v3368_v58 = vpack.c.bf16 %v2772_v36, %v2770_v28  ;;  %v2701_v1 = vadd.f32 %v2700_v37, %v4542_v44  ;;  %v2774_v2 = vadd.f32 %v2773_v43, %v4545_v60 }
 0x3df   : > { %v2702_v59 = vpop.f32.mrf.mxu0  ;;  %v2775_v0 = vpop.f32.mrf.mxu1 }
 0x3e0   : > { %3001 = vst [vmem:[%s4499_s11 + $0x90] sm:$0xff] %v3367_v57  ;;  %3002 = vst.msk [vmem:[%s4499_s11 + $0x98] sm:$0xff] %vm4565_vm6, %v3368_v58  ;;  %v2703_v3 = vadd.f32 %v2702_v59, %v4548_v61  ;;  %v2776_v4 = vadd.f32 %v2775_v0, %v4551_v63 }
 0x3e1   : > { %v2706_v5 = vpop.f32.mrf.mxu0  ;;  %v2779_v6 = vpop.f32.mrf.mxu1 }
 0x3e2   : > { %v3371_v62 = vpack.c.bf16 %v2703_v3, %v2701_v1  ;;  %v3372_v47 = vpack.c.bf16 %v2776_v4, %v2774_v2  ;;  %v2707_v23 = vadd.f32 %v2706_v5, %v4542_v44  ;;  %v2780_v26 = vadd.f32 %v2779_v6, %v4545_v60 }
 0x3e3   : > { %v2708_v7 = vpop.f32.mrf.mxu0  ;;  %v2781_v41 = vpop.f32.mrf.mxu1 }
 0x3e4   : > { %3005 = vst [vmem:[%s4499_s11 + $0xb0] sm:$0xff] %v3371_v62  ;;  %3006 = vst.msk [vmem:[%s4499_s11 + $0xb8] sm:$0xff] %vm4565_vm6, %v3372_v47  ;;  %v2709_v48 = vadd.f32 %v2708_v7, %v4548_v61  ;;  %v2782_v9 = vadd.f32 %v2781_v41, %v4551_v63 }
 0x3e5   : > { %v2710_v11 = vpop.f32.mrf.mxu0  ;;  %v2783_v27 = vpop.f32.mrf.mxu1 }
 0x3e6   : > { %v3375_v29 = vpack.c.bf16 %v2709_v48, %v2707_v23  ;;  %v3376_v30 = vpack.c.bf16 %v2782_v9, %v2780_v26  ;;  %v2711_v32 = vadd.f32 %v2710_v11, %v4542_v44  ;;  %v2784_v34 = vadd.f32 %v2783_v27, %v4545_v60 }
 0x3e7   : > { %v2712_v10 = vpop.f32.mrf.mxu0  ;;  %v2785_v12 = vpop.f32.mrf.mxu1 }
 0x3e8   : > { %3009 = vst [vmem:[%s4499_s11 + $0xd0] sm:$0xff] %v3375_v29  ;;  %3010 = vst.msk [vmem:[%s4499_s11 + $0xd8] sm:$0xff] %vm4565_vm6, %v3376_v30  ;;  %v2713_v14 = vadd.f32 %v2712_v10, %v4548_v61  ;;  %v2786_v16 = vadd.f32 %v2785_v12, %v4551_v63 }
 0x3ea   : > { %v3379_v35 = vpack.c.bf16 %v2713_v14, %v2711_v32  ;;  %v3380_v33 = vpack.c.bf16 %v2786_v16, %v2784_v34 }
 0x3ec   : > { %3013 = vst [vmem:[%s4499_s11 + $0xf0] sm:$0xff] %v3379_v35  ;;  %3014 = vst.msk [vmem:[%s4499_s11 + $0xf8] sm:$0xff] %vm4565_vm6, %v3380_v33 }
 0x3ed PF: > { %s21_s13 = sadd.s32 1, %s3772_s13  }
 0x3ee   : > { %p18_p4 = scmp.ge.s32.totalorder %s21_s13, 4  }
 0x3f0   :  { %20 = sbr.rel (!%p18_p4) target bundleno = 1 (0x1), region = 98 }

</bundles_post_ra>
